<compile_context>
chip_gen: v7x
topology: tpu7x:2x2x1
jax: 0.10.0
libtpu: 0.0.40
codegen_flags: <defaults>
</compile_context>

<pallas_src>
import math
import functools

import jax
import jax.numpy as jnp
from jax.experimental import pallas as pl
from jax.experimental.pallas import tpu as pltpu


HP = 128        # padded lane width for every feature dimension
NW_BASE = 4     # te_w1, te_w2, emb_wx, emb_wt
NW_LAYER = 10   # e_whi, e_whj, e_wd2_outer, e_wea, e_w2, c_w1, c_w2_rep, n_wh, n_wagg, n_w2
NB_LAYER = 8    # e_b1, e_b2, c_b1, c_b2_rep, n_b1, n_b2, <pad>, <pad>


def _silu(z):
    return z * jax.nn.sigmoid(z)


# ----------------------------------------------------------------------------
# Fused Pallas kernel: q_sample + time-embed MLP + node embed + EGNN layers
# ----------------------------------------------------------------------------

def _fused_diffusion_kernel(
    # inputs -------------------------------------------------------------
    coef_ref,          # SMEM (2,)   [sqrt_ac_t, sqrt_1m_ac_t]
    emb_ref,           # [8, HP] f32 sinusoidal time embedding (row 0 real)
    x_ref,             # [N, HP] bf16 node features (static)
    pos_ref,           # [N, HP] f32
    noise_ref,         # [N, HP] f32
    ea_ref,            # [E, HP] bf16 edge attributes (static)
    gs_ref,            # [2E, N] bf16 stacked one-hot gather [g_row; g_col]
    gd_ref,            # [E, N]  bf16 g_row - g_col
    sr_ref,            # [N, E]  bf16 scatter (= g_row.T)
    wbase_ref,         # [4, HP, HP] bf16
    bbase_ref,         # [8, HP]     f32 (rows 0..2 real)
    wlyr_ref,          # [L*10, HP, HP] bf16
    blyr_ref,          # [L, 8, HP]     f32
    # outputs ------------------------------------------------------------
    pred_ref, noisy_ref,   # [N, HP] f32 each
    *, num_layers, num_edges, inv_num_edges):
    f32 = jnp.float32
    bf16 = jnp.bfloat16

    def bdot(a, b):
        # bf16 MXU matmul with f32 accumulation
        return jnp.dot(a.astype(bf16), b.astype(bf16), preferred_element_type=f32)

    # ---- q_sample: noisy = sa * pos + sb * noise (padded lanes stay zero) ----
    sa = coef_ref[0]
    sb = coef_ref[1]
    noisy = sa * pos_ref[...] + sb * noise_ref[...]
    noisy_ref[...] = noisy

    bb = bbase_ref[...]                                           # [8, HP]

    # ---- time embedding MLP (Linear -> SiLU -> Linear), only row 0 is real ----
    te_h = _silu(bdot(emb_ref[...], wbase_ref[0]) + bb[0:1, :])
    te = bdot(te_h, wbase_ref[1]) + bb[1:2, :]                    # [8, HP]

    # ---- node embedding: h = x @ W_x + time_row @ W_t + b (time row broadcast) ----
    t_row = bdot(te, wbase_ref[3])[0:1, :]                        # [1, HP]
    h = bdot(x_ref[...], wbase_ref[2]) + t_row + bb[2:3, :]       # [N, HP] f32

    gs = gs_ref[...]            # [2E, N]
    gd = gd_ref[...]            # [E, N]
    sr = sr_ref[...]            # [N, E]
    ea = ea_ref[...]            # [E, HP]
    E = num_edges
    inv_e = f32(inv_num_edges)
    cur_pos = noisy

    for l in range(num_layers):
        def W(k, _l=l):
            return wlyr_ref[_l * NW_LAYER + k]
        bl = blyr_ref[l]                                          # [8, HP] f32

        # fused gathers on the MXU
        hij = bdot(gs, h)                                         # [2E, HP]
        hi = hij[:E]
        hj = hij[E:]
        rel = bdot(gd, cur_pos)                                   # [E, HP] (3 real lanes)

        # edge MLP: the ||rel||^2 term goes through a rank-1 MXU matmul
        # (W(2) = ones((HP,1)) @ w_d2_row), so no XLU lane-sum is needed.
        pre = _silu(bdot(hi, W(0)) + bdot(hj, W(1))
                    + bdot(rel * rel, W(2))
                    + bdot(ea, W(3)) + bl[0:1, :])
        m = bdot(pre, W(4)) + bl[1:2, :]                          # [E, HP]

        # coord MLP: c_w2 column (and c_b2) replicated across all lanes, so
        # every lane of cw already holds the per-edge scalar -> rel * cw direct.
        ch = _silu(bdot(m, W(5)) + bl[2:3, :])
        cw = bdot(ch, W(6)) + bl[3:4, :]                          # [E, HP]

        # scatter-adds on the MXU
        cur_pos = cur_pos + bdot(sr, rel * cw) * inv_e            # [N, HP]
        agg = bdot(sr, m)                                         # [N, HP]

        # node MLP (first layer split: h-block and agg-block), residual
        npre = _silu(bdot(h, W(7)) + bdot(agg, W(8)) + bl[4:5, :])
        h = h + bdot(npre, W(9)) + bl[5:6, :]

    pred_ref[...] = cur_pos


# ----------------------------------------------------------------------------
# Noise scheduler (cosine) -- matches NoiseScheduler.__init__
# ----------------------------------------------------------------------------

def make_cosine_scheduler(timesteps):
    steps = timesteps + 1
    x = jnp.linspace(0.0, float(timesteps), steps)
    alphas_cumprod = jnp.cos((x / timesteps + 0.008) / (1 + 0.008) * jnp.pi * 0.5) ** 2
    alphas_cumprod = alphas_cumprod / alphas_cumprod[0]
    betas = 1.0 - alphas_cumprod[1:] / alphas_cumprod[:-1]
    betas = jnp.clip(betas, 0.0001, 0.9999)
    alphas = 1.0 - betas
    ac = jnp.cumprod(alphas)
    return {
        "betas": betas,
        "alphas": alphas,
        "alphas_cumprod": ac,
        "sqrt_ac": jnp.sqrt(ac),
        "sqrt_1m_ac": jnp.sqrt(1.0 - ac),
    }


# ----------------------------------------------------------------------------
# Parameter initialization (deterministic) + packing into padded kernel layout
# ----------------------------------------------------------------------------

def _init_linear(key, din, dout):
    kw, kb = jax.random.split(key)
    scale = 1.0 / math.sqrt(din)
    w = jax.random.uniform(kw, (din, dout), jnp.float32, -scale, scale)
    b = jax.random.uniform(kb, (dout,), jnp.float32, -scale, scale)
    return w, b


def init_params(key, node_dim, edge_dim, hidden_dim, num_layers):
    keys = jax.random.split(key, 4 + 6 * num_layers)
    ki = iter(keys)
    p = {}
    p["te_w1"], p["te_b1"] = _init_linear(next(ki), hidden_dim, hidden_dim)
    p["te_w2"], p["te_b2"] = _init_linear(next(ki), hidden_dim, hidden_dim)
    egnn_node_in = node_dim + hidden_dim
    p["embed_w"], p["embed_b"] = _init_linear(next(ki), egnn_node_in, hidden_dim)
    layers = []
    for _ in range(num_layers):
        lp = {}
        edge_in = 2 * hidden_dim + 1 + edge_dim
        lp["e_w1"], lp["e_b1"] = _init_linear(next(ki), edge_in, hidden_dim)
        lp["e_w2"], lp["e_b2"] = _init_linear(next(ki), hidden_dim, hidden_dim)
        lp["c_w1"], lp["c_b1"] = _init_linear(next(ki), hidden_dim, hidden_dim)
        lp["c_w2"], lp["c_b2"] = _init_linear(next(ki), hidden_dim, 1)
        lp["n_w1"], lp["n_b1"] = _init_linear(next(ki), 2 * hidden_dim, hidden_dim)
        lp["n_w2"], lp["n_b2"] = _init_linear(next(ki), hidden_dim, hidden_dim)
        layers.append(lp)
    p["layers"] = layers
    return p


def _pad2(a, rows, cols):
    a = jnp.asarray(a, jnp.float32)
    if a.ndim == 1:
        a = a.reshape(1, -1)
    out = jnp.zeros((rows, cols), jnp.float32)
    return out.at[:a.shape[0], :a.shape[1]].set(a)


def pack_params(params, node_dim, edge_dim, hidden_dim):
    """Split / zero-pad weights into 4 packed slabs (bf16 weights, f32 biases)."""
    H = hidden_dim
    H2 = 2 * H

    def pw(a):
        return _pad2(a, HP, HP)

    def prow(a):
        return _pad2(a, 1, HP)

    ew = params["embed_w"]
    wbase = jnp.stack([pw(params["te_w1"]), pw(params["te_w2"]),
                       pw(ew[:node_dim]), pw(ew[node_dim:])]).astype(jnp.bfloat16)

    bbase = jnp.zeros((8, HP), jnp.float32)
    bbase = bbase.at[0, :H].set(params["te_b1"])
    bbase = bbase.at[1, :H].set(params["te_b2"])
    bbase = bbase.at[2, :H].set(params["embed_b"])

    ones_col = jnp.ones((HP, 1), jnp.float32)
    w_layers, b_layers = [], []
    for lp in params["layers"]:
        wd2_row = prow(lp["e_w1"][H2])                           # [1, HP]
        e_wd2_outer = ones_col @ wd2_row                         # rank-1 [HP, HP]
        c_col = jnp.zeros((HP, 1), jnp.float32).at[:H, 0].set(lp["c_w2"][:, 0])
        c_w2_rep = jnp.broadcast_to(c_col, (HP, HP))             # column replicated
        w_layers.append(jnp.stack([
            pw(lp["e_w1"][:H]),          # 0: e_whi
            pw(lp["e_w1"][H:H2]),        # 1: e_whj
            e_wd2_outer,                 # 2: ||rel||^2 rank-1 term
            pw(lp["e_w1"][H2 + 1:]),     # 3: e_wea
            pw(lp["e_w2"]),              # 4
            pw(lp["c_w1"]),              # 5
            c_w2_rep,                    # 6
            pw(lp["n_w1"][:H]),          # 7: n_wh
            pw(lp["n_w1"][H:]),          # 8: n_wagg
            pw(lp["n_w2"]),              # 9
        ]))
        bl = jnp.zeros((NB_LAYER, HP), jnp.float32)
        bl = bl.at[0, :H].set(lp["e_b1"])
        bl = bl.at[1, :H].set(lp["e_b2"])
        bl = bl.at[2, :H].set(lp["c_b1"])
        bl = bl.at[3, :].set(lp["c_b2"][0])                      # replicated scalar
        bl = bl.at[4, :H].set(lp["n_b1"])
        bl = bl.at[5, :H].set(lp["n_b2"])
        b_layers.append(bl)

    wlyr = jnp.concatenate(w_layers, axis=0).astype(jnp.bfloat16)   # [L*10, HP, HP]
    blyr = jnp.stack(b_layers)                                      # [L, 8, HP]
    return {"wbase": wbase, "bbase": bbase, "wlyr": wlyr, "blyr": blyr}


# ----------------------------------------------------------------------------
# Static per-graph preprocessing (hoisted: done ONCE per graph, not per step)
# ----------------------------------------------------------------------------

def precompute_graph(x, pos, edge_index, edge_attr):
    n_nodes = x.shape[0]
    n_edges = edge_index.shape[1]
    row, col = edge_index[0], edge_index[1]
    g_row = jax.nn.one_hot(row, n_nodes, dtype=jnp.float32)        # [E, N]
    g_col = jax.nn.one_hot(col, n_nodes, dtype=jnp.float32)        # [E, N]
    return {
        "x_pad": _pad2(x, n_nodes, HP).astype(jnp.bfloat16),
        "pos_pad": _pad2(pos, n_nodes, HP),
        "ea_pad": _pad2(edge_attr, n_edges, HP).astype(jnp.bfloat16),
        "gs": jnp.concatenate([g_row, g_col], axis=0).astype(jnp.bfloat16),  # [2E, N]
        "gd": (g_row - g_col).astype(jnp.bfloat16),                          # [E, N]
        "sr": g_row.T.astype(jnp.bfloat16),                                  # [N, E]
    }


# ----------------------------------------------------------------------------
# Per-step forward (mirrors DiffusionModel.forward, batch_size = 1)
# ----------------------------------------------------------------------------

def diffusion_step(pp, sched, graph, t, noise, *, hidden_dim, num_layers,
                   noise_scale=1.0):
    n_nodes = graph["x_pad"].shape[0]
    n_edges = graph["ea_pad"].shape[0]

    noise = noise.astype(jnp.float32) * noise_scale
    sa = sched["sqrt_ac"][t[0]]
    sb = sched["sqrt_1m_ac"][t[0]]
    coefs = jnp.stack([sa, sb]).astype(jnp.float32)                 # (2,) SMEM

    # sinusoidal time embedding (row 0 real, rows 1..7 zero padding)
    half = hidden_dim // 2
    freqs = jnp.exp(jnp.arange(half, dtype=jnp.float32)
                    * (-math.log(10000.0) / (half - 1)))
    emb = t.astype(jnp.float32)[:, None] * freqs[None, :]
    emb = jnp.concatenate([jnp.sin(emb), jnp.cos(emb)], axis=-1)
    emb_pad = jnp.zeros((8, HP), jnp.float32).at[0, :hidden_dim].set(emb[0])

    noise_pad = _pad2(noise, n_nodes, HP)

    kernel = functools.partial(_fused_diffusion_kernel,
                               num_layers=num_layers,
                               num_edges=n_edges,
                               inv_num_edges=1.0 / float(n_edges))

    vmem = lambda: pl.BlockSpec(memory_space=pltpu.MemorySpace.VMEM)
    smem = pl.BlockSpec(memory_space=pltpu.MemorySpace.SMEM)

    args = (coefs, emb_pad, graph["x_pad"], graph["pos_pad"], noise_pad,
            graph["ea_pad"], graph["gs"], graph["gd"], graph["sr"],
            pp["wbase"], pp["bbase"], pp["wlyr"], pp["blyr"])

    bytes_accessed = int(sum(int(a.size) * a.dtype.itemsize for a in args)
                         + 2 * n_nodes * HP * 4)
    flops = int(2 * HP * HP * (num_layers * (7 * n_edges + 3 * n_nodes)
                               + 16 + n_nodes)
                + 2 * HP * num_layers * 4 * n_edges * n_nodes)
    transcendentals = int(num_layers * HP * (2 * n_edges + n_nodes) + 8 * HP)

    pred_pad, noisy_pad = pl.pallas_call(
        kernel,
        out_shape=(jax.ShapeDtypeStruct((n_nodes, HP), jnp.float32),
                   jax.ShapeDtypeStruct((n_nodes, HP), jnp.float32)),
        in_specs=[smem] + [vmem() for _ in range(12)],
        out_specs=(vmem(), vmem()),
        cost_estimate=pl.CostEstimate(flops=flops,
                                      transcendentals=transcendentals,
                                      bytes_accessed=bytes_accessed),
        compiler_params=pltpu.CompilerParams(vmem_limit_bytes=32 * 1024 * 1024),
    )(*args)

    pred_noise = pred_pad[:, :3]          # EGNN's updated coordinates (as in reference)
    noisy_pos = noisy_pad[:, :3][None]    # q_sample broadcast -> [1, N, 3]
    return pred_noise, noisy_pos


# ----------------------------------------------------------------------------
# Main
# ----------------------------------------------------------------------------

if __name__ == "__main__":
    node_dim, edge_dim, hidden_dim, num_layers = 16, 4, 32, 2
    timesteps = 100
    num_nodes, num_edges = 16, 32

    key = jax.random.PRNGKey(0)
    kx, kp, ke, ka, kn, _ = jax.random.split(key, 6)

    x = jax.random.normal(kx, (num_nodes, node_dim), jnp.float32)
    pos = jax.random.normal(kp, (num_nodes, 3), jnp.float32)
    edge_index = jax.random.randint(ke, (2, num_edges), 0, num_nodes, jnp.int32)
    edge_attr = jax.random.normal(ka, (num_edges, edge_dim), jnp.float32)
    noise = jax.random.normal(kn, (num_nodes, 3), jnp.float32)
    t = jnp.array([7], dtype=jnp.int32)

    params = init_params(jax.random.PRNGKey(42), node_dim, edge_dim, hidden_dim, num_layers)
    packed = pack_params(params, node_dim, edge_dim, hidden_dim)
    sched = make_cosine_scheduler(timesteps)
    graph = precompute_graph(x, pos, edge_index, edge_attr)   # hoisted static preprocessing

    step = jax.jit(functools.partial(diffusion_step,
                                     hidden_dim=hidden_dim,
                                     num_layers=num_layers,
                                     noise_scale=1.0))
    pred_noise, noisy_pos = step(packed, sched, graph, t, noise)

    jax.block_until_ready((pred_noise, noisy_pos))
    assert pred_noise.shape == (num_nodes, 3)
    assert noisy_pos.shape == (1, num_nodes, 3)
    print("KERNEL_OK")
</pallas_src>

<mosaic_0001>
module attributes {stable_mosaic.version = 11 : i64} {
  func.func @_fused_diffusion_kernel(%arg0: memref<2xf32, #tpu.memory_space<smem>>, %arg1: memref<8x128xf32, #tpu.memory_space<vmem>>, %arg2: memref<16x128xbf16, #tpu.memory_space<vmem>>, %arg3: memref<16x128xf32, #tpu.memory_space<vmem>>, %arg4: memref<16x128xf32, #tpu.memory_space<vmem>>, %arg5: memref<32x128xbf16, #tpu.memory_space<vmem>>, %arg6: memref<64x16xbf16, #tpu.memory_space<vmem>>, %arg7: memref<32x16xbf16, #tpu.memory_space<vmem>>, %arg8: memref<16x32xbf16, #tpu.memory_space<vmem>>, %arg9: memref<4x128x128xbf16, #tpu.memory_space<vmem>>, %arg10: memref<8x128xf32, #tpu.memory_space<vmem>>, %arg11: memref<20x128x128xbf16, #tpu.memory_space<vmem>>, %arg12: memref<2x8x128xf32, #tpu.memory_space<vmem>>, %arg13: memref<16x128xf32, #tpu.memory_space<vmem>>, %arg14: memref<16x128xf32, #tpu.memory_space<vmem>>) attributes {dimension_semantics = [], scalar_prefetch = 0 : i64, scratch_operands = 0 : i64, tpu.core_type = #tpu.core_type<tc>} {
    %c0 = arith.constant 0 : index
    %0 = memref.load %arg0[%c0] : memref<2xf32, #tpu.memory_space<smem>>
    %c1 = arith.constant 1 : index
    %1 = memref.load %arg0[%c1] : memref<2xf32, #tpu.memory_space<smem>>
    %c0_0 = arith.constant 0 : index
    %c0_1 = arith.constant 0 : index
    %2 = vector.load %arg3[%c0_0, %c0_1] : memref<16x128xf32, #tpu.memory_space<vmem>>, vector<16x128xf32>
    %3 = vector.broadcast %0 : f32 to vector<16x128xf32>
    %4 = arith.mulf %3, %2 : vector<16x128xf32>
    %c0_2 = arith.constant 0 : index
    %c0_3 = arith.constant 0 : index
    %5 = vector.load %arg4[%c0_2, %c0_3] : memref<16x128xf32, #tpu.memory_space<vmem>>, vector<16x128xf32>
    %6 = vector.broadcast %1 : f32 to vector<16x128xf32>
    %7 = arith.mulf %6, %5 : vector<16x128xf32>
    %8 = arith.addf %4, %7 : vector<16x128xf32>
    %c0_4 = arith.constant 0 : index
    %c0_5 = arith.constant 0 : index
    %9 = vector.load %arg14[%c0_4, %c0_5] : memref<16x128xf32, #tpu.memory_space<vmem>>, vector<16x128xf32>
    tpu.vector_store %arg14[%c0_4, %c0_5], %8 {strides = array<i32>} : memref<16x128xf32, #tpu.memory_space<vmem>>, vector<16x128xf32>,
    %c0_6 = arith.constant 0 : index
    %c0_7 = arith.constant 0 : index
    %10 = vector.load %arg10[%c0_6, %c0_7] : memref<8x128xf32, #tpu.memory_space<vmem>>, vector<8x128xf32>
    %c0_8 = arith.constant 0 : index
    %c0_9 = arith.constant 0 : index
    %11 = vector.load %arg1[%c0_8, %c0_9] : memref<8x128xf32, #tpu.memory_space<vmem>>, vector<8x128xf32>
    %c0_10 = arith.constant 0 : index
    %c0_11 = arith.constant 0 : index
    %c0_12 = arith.constant 0 : index
    %12 = vector.load %arg9[%c0_10, %c0_11, %c0_12] : memref<4x128x128xbf16, #tpu.memory_space<vmem>>, vector<1x128x128xbf16>
    %13 = vector.shape_cast %12 : vector<1x128x128xbf16> to vector<128x128xbf16>
    %14 = arith.truncf %11 : vector<8x128xf32> to vector<8x128xbf16>
    %cst = arith.constant dense<0.000000e+00> : vector<8x128xf32>
    %15 = tpu.matmul %14, %13, %cst {dimension_numbers = #tpu.dot_dimension_numbers<[1], [0], [0], [1], [0, 0, 1, 1], [], []>} : vector<8x128xbf16>, vector<128x128xbf16>, vector<8x128xf32> -> vector<8x128xf32>
    %16 = vector.extract_strided_slice %10 {offsets = [0, 0], sizes = [1, 128], strides = [1, 1]} : vector<8x128xf32> to vector<1x128xf32>
    %17 = vector.broadcast %16 : vector<1x128xf32> to vector<8x128xf32>
    %18 = arith.addf %15, %17 : vector<8x128xf32>
    %19 = arith.negf %18 : vector<8x128xf32>
    %20 = math.exp %19 : vector<8x128xf32>
    %cst_13 = arith.constant 1.000000e+00 : f32
    %21 = vector.broadcast %cst_13 : f32 to vector<8x128xf32>
    %22 = arith.addf %21, %20 : vector<8x128xf32>
    %23 = arith.divf %21, %22 : vector<8x128xf32>
    %24 = arith.mulf %18, %23 : vector<8x128xf32>
    %c1_14 = arith.constant 1 : index
    %c0_15 = arith.constant 0 : index
    %c0_16 = arith.constant 0 : index
    %25 = vector.load %arg9[%c1_14, %c0_15, %c0_16] : memref<4x128x128xbf16, #tpu.memory_space<vmem>>, vector<1x128x128xbf16>
    %26 = vector.shape_cast %25 : vector<1x128x128xbf16> to vector<128x128xbf16>
    %27 = arith.truncf %24 : vector<8x128xf32> to vector<8x128xbf16>
    %cst_17 = arith.constant dense<0.000000e+00> : vector<8x128xf32>
    %28 = tpu.matmul %27, %26, %cst_17 {dimension_numbers = #tpu.dot_dimension_numbers<[1], [0], [0], [1], [0, 0, 1, 1], [], []>} : vector<8x128xbf16>, vector<128x128xbf16>, vector<8x128xf32> -> vector<8x128xf32>
    %29 = vector.extract_strided_slice %10 {offsets = [1, 0], sizes = [1, 128], strides = [1, 1]} : vector<8x128xf32> to vector<1x128xf32>
    %30 = vector.broadcast %29 : vector<1x128xf32> to vector<8x128xf32>
    %31 = arith.addf %28, %30 : vector<8x128xf32>
    %c3 = arith.constant 3 : index
    %c0_18 = arith.constant 0 : index
    %c0_19 = arith.constant 0 : index
    %32 = vector.load %arg9[%c3, %c0_18, %c0_19] : memref<4x128x128xbf16, #tpu.memory_space<vmem>>, vector<1x128x128xbf16>
    %33 = vector.shape_cast %32 : vector<1x128x128xbf16> to vector<128x128xbf16>
    %34 = arith.truncf %31 : vector<8x128xf32> to vector<8x128xbf16>
    %cst_20 = arith.constant dense<0.000000e+00> : vector<8x128xf32>
    %35 = tpu.matmul %34, %33, %cst_20 {dimension_numbers = #tpu.dot_dimension_numbers<[1], [0], [0], [1], [0, 0, 1, 1], [], []>} : vector<8x128xbf16>, vector<128x128xbf16>, vector<8x128xf32> -> vector<8x128xf32>
    %36 = vector.extract_strided_slice %35 {offsets = [0, 0], sizes = [1, 128], strides = [1, 1]} : vector<8x128xf32> to vector<1x128xf32>
    %c0_21 = arith.constant 0 : index
    %c0_22 = arith.constant 0 : index
    %37 = vector.load %arg2[%c0_21, %c0_22] : memref<16x128xbf16, #tpu.memory_space<vmem>>, vector<16x128xbf16>
    %c2 = arith.constant 2 : index
    %c0_23 = arith.constant 0 : index
    %c0_24 = arith.constant 0 : index
    %38 = vector.load %arg9[%c2, %c0_23, %c0_24] : memref<4x128x128xbf16, #tpu.memory_space<vmem>>, vector<1x128x128xbf16>
    %39 = vector.shape_cast %38 : vector<1x128x128xbf16> to vector<128x128xbf16>
    %cst_25 = arith.constant dense<0.000000e+00> : vector<16x128xf32>
    %40 = tpu.matmul %37, %39, %cst_25 {dimension_numbers = #tpu.dot_dimension_numbers<[1], [0], [0], [1], [0, 0, 1, 1], [], []>} : vector<16x128xbf16>, vector<128x128xbf16>, vector<16x128xf32> -> vector<16x128xf32>
    %41 = vector.broadcast %36 : vector<1x128xf32> to vector<16x128xf32>
    %42 = arith.addf %40, %41 : vector<16x128xf32>
    %43 = vector.extract_strided_slice %10 {offsets = [2, 0], sizes = [1, 128], strides = [1, 1]} : vector<8x128xf32> to vector<1x128xf32>
    %44 = vector.broadcast %43 : vector<1x128xf32> to vector<16x128xf32>
    %45 = arith.addf %42, %44 : vector<16x128xf32>
    %c0_26 = arith.constant 0 : index
    %c0_27 = arith.constant 0 : index
    %46 = vector.load %arg6[%c0_26, %c0_27] : memref<64x16xbf16, #tpu.memory_space<vmem>>, vector<64x16xbf16>
    %c0_28 = arith.constant 0 : index
    %c0_29 = arith.constant 0 : index
    %47 = vector.load %arg7[%c0_28, %c0_29] : memref<32x16xbf16, #tpu.memory_space<vmem>>, vector<32x16xbf16>
    %c0_30 = arith.constant 0 : index
    %c0_31 = arith.constant 0 : index
    %48 = vector.load %arg8[%c0_30, %c0_31] : memref<16x32xbf16, #tpu.memory_space<vmem>>, vector<16x32xbf16>
    %c0_32 = arith.constant 0 : index
    %c0_33 = arith.constant 0 : index
    %49 = vector.load %arg5[%c0_32, %c0_33] : memref<32x128xbf16, #tpu.memory_space<vmem>>, vector<32x128xbf16>
    %c0_34 = arith.constant 0 : index
    %c0_35 = arith.constant 0 : index
    %c0_36 = arith.constant 0 : index
    %50 = vector.load %arg12[%c0_34, %c0_35, %c0_36] : memref<2x8x128xf32, #tpu.memory_space<vmem>>, vector<1x8x128xf32>
    %51 = vector.shape_cast %50 : vector<1x8x128xf32> to vector<8x128xf32>
    %52 = arith.truncf %45 : vector<16x128xf32> to vector<16x128xbf16>
    %cst_37 = arith.constant dense<0.000000e+00> : vector<64x128xf32>
    %53 = tpu.matmul %46, %52, %cst_37 {dimension_numbers = #tpu.dot_dimension_numbers<[1], [0], [0], [1], [0, 0, 1, 1], [], []>} : vector<64x16xbf16>, vector<16x128xbf16>, vector<64x128xf32> -> vector<64x128xf32>
    %54 = vector.extract_strided_slice %53 {offsets = [0, 0], sizes = [32, 128], strides = [1, 1]} : vector<64x128xf32> to vector<32x128xf32>
    %55 = vector.extract_strided_slice %53 {offsets = [32, 0], sizes = [32, 128], strides = [1, 1]} : vector<64x128xf32> to vector<32x128xf32>
    %56 = arith.truncf %8 : vector<16x128xf32> to vector<16x128xbf16>
    %cst_38 = arith.constant dense<0.000000e+00> : vector<32x128xf32>
    %57 = tpu.matmul %47, %56, %cst_38 {dimension_numbers = #tpu.dot_dimension_numbers<[1], [0], [0], [1], [0, 0, 1, 1], [], []>} : vector<32x16xbf16>, vector<16x128xbf16>, vector<32x128xf32> -> vector<32x128xf32>
    %c0_39 = arith.constant 0 : index
    %c0_40 = arith.constant 0 : index
    %c0_41 = arith.constant 0 : index
    %58 = vector.load %arg11[%c0_39, %c0_40, %c0_41] : memref<20x128x128xbf16, #tpu.memory_space<vmem>>, vector<1x128x128xbf16>
    %59 = vector.shape_cast %58 : vector<1x128x128xbf16> to vector<128x128xbf16>
    %60 = arith.truncf %54 : vector<32x128xf32> to vector<32x128xbf16>
    %cst_42 = arith.constant dense<0.000000e+00> : vector<32x128xf32>
    %61 = tpu.matmul %60, %59, %cst_42 {dimension_numbers = #tpu.dot_dimension_numbers<[1], [0], [0], [1], [0, 0, 1, 1], [], []>} : vector<32x128xbf16>, vector<128x128xbf16>, vector<32x128xf32> -> vector<32x128xf32>
    %c1_43 = arith.constant 1 : index
    %c0_44 = arith.constant 0 : index
    %c0_45 = arith.constant 0 : index
    %62 = vector.load %arg11[%c1_43, %c0_44, %c0_45] : memref<20x128x128xbf16, #tpu.memory_space<vmem>>, vector<1x128x128xbf16>
    %63 = vector.shape_cast %62 : vector<1x128x128xbf16> to vector<128x128xbf16>
    %64 = arith.truncf %55 : vector<32x128xf32> to vector<32x128xbf16>
    %cst_46 = arith.constant dense<0.000000e+00> : vector<32x128xf32>
    %65 = tpu.matmul %64, %63, %cst_46 {dimension_numbers = #tpu.dot_dimension_numbers<[1], [0], [0], [1], [0, 0, 1, 1], [], []>} : vector<32x128xbf16>, vector<128x128xbf16>, vector<32x128xf32> -> vector<32x128xf32>
    %66 = arith.addf %61, %65 : vector<32x128xf32>
    %67 = arith.mulf %57, %57 : vector<32x128xf32>
    %c2_47 = arith.constant 2 : index
    %c0_48 = arith.constant 0 : index
    %c0_49 = arith.constant 0 : index
    %68 = vector.load %arg11[%c2_47, %c0_48, %c0_49] : memref<20x128x128xbf16, #tpu.memory_space<vmem>>, vector<1x128x128xbf16>
    %69 = vector.shape_cast %68 : vector<1x128x128xbf16> to vector<128x128xbf16>
    %70 = arith.truncf %67 : vector<32x128xf32> to vector<32x128xbf16>
    %cst_50 = arith.constant dense<0.000000e+00> : vector<32x128xf32>
    %71 = tpu.matmul %70, %69, %cst_50 {dimension_numbers = #tpu.dot_dimension_numbers<[1], [0], [0], [1], [0, 0, 1, 1], [], []>} : vector<32x128xbf16>, vector<128x128xbf16>, vector<32x128xf32> -> vector<32x128xf32>
    %72 = arith.addf %66, %71 : vector<32x128xf32>
    %c3_51 = arith.constant 3 : index
    %c0_52 = arith.constant 0 : index
    %c0_53 = arith.constant 0 : index
    %73 = vector.load %arg11[%c3_51, %c0_52, %c0_53] : memref<20x128x128xbf16, #tpu.memory_space<vmem>>, vector<1x128x128xbf16>
    %74 = vector.shape_cast %73 : vector<1x128x128xbf16> to vector<128x128xbf16>
    %cst_54 = arith.constant dense<0.000000e+00> : vector<32x128xf32>
    %75 = tpu.matmul %49, %74, %cst_54 {dimension_numbers = #tpu.dot_dimension_numbers<[1], [0], [0], [1], [0, 0, 1, 1], [], []>} : vector<32x128xbf16>, vector<128x128xbf16>, vector<32x128xf32> -> vector<32x128xf32>
    %76 = arith.addf %72, %75 : vector<32x128xf32>
    %77 = vector.extract_strided_slice %51 {offsets = [0, 0], sizes = [1, 128], strides = [1, 1]} : vector<8x128xf32> to vector<1x128xf32>
    %78 = vector.broadcast %77 : vector<1x128xf32> to vector<32x128xf32>
    %79 = arith.addf %76, %78 : vector<32x128xf32>
    %80 = arith.negf %79 : vector<32x128xf32>
    %81 = math.exp %80 : vector<32x128xf32>
    %cst_55 = arith.constant 1.000000e+00 : f32
    %82 = vector.broadcast %cst_55 : f32 to vector<32x128xf32>
    %83 = arith.addf %82, %81 : vector<32x128xf32>
    %84 = arith.divf %82, %83 : vector<32x128xf32>
    %85 = arith.mulf %79, %84 : vector<32x128xf32>
    %c4 = arith.constant 4 : index
    %c0_56 = arith.constant 0 : index
    %c0_57 = arith.constant 0 : index
    %86 = vector.load %arg11[%c4, %c0_56, %c0_57] : memref<20x128x128xbf16, #tpu.memory_space<vmem>>, vector<1x128x128xbf16>
    %87 = vector.shape_cast %86 : vector<1x128x128xbf16> to vector<128x128xbf16>
    %88 = arith.truncf %85 : vector<32x128xf32> to vector<32x128xbf16>
    %cst_58 = arith.constant dense<0.000000e+00> : vector<32x128xf32>
    %89 = tpu.matmul %88, %87, %cst_58 {dimension_numbers = #tpu.dot_dimension_numbers<[1], [0], [0], [1], [0, 0, 1, 1], [], []>} : vector<32x128xbf16>, vector<128x128xbf16>, vector<32x128xf32> -> vector<32x128xf32>
    %90 = vector.extract_strided_slice %51 {offsets = [1, 0], sizes = [1, 128], strides = [1, 1]} : vector<8x128xf32> to vector<1x128xf32>
    %91 = vector.broadcast %90 : vector<1x128xf32> to vector<32x128xf32>
    %92 = arith.addf %89, %91 : vector<32x128xf32>
    %c5 = arith.constant 5 : index
    %c0_59 = arith.constant 0 : index
    %c0_60 = arith.constant 0 : index
    %93 = vector.load %arg11[%c5, %c0_59, %c0_60] : memref<20x128x128xbf16, #tpu.memory_space<vmem>>, vector<1x128x128xbf16>
    %94 = vector.shape_cast %93 : vector<1x128x128xbf16> to vector<128x128xbf16>
    %95 = arith.truncf %92 : vector<32x128xf32> to vector<32x128xbf16>
    %cst_61 = arith.constant dense<0.000000e+00> : vector<32x128xf32>
    %96 = tpu.matmul %95, %94, %cst_61 {dimension_numbers = #tpu.dot_dimension_numbers<[1], [0], [0], [1], [0, 0, 1, 1], [], []>} : vector<32x128xbf16>, vector<128x128xbf16>, vector<32x128xf32> -> vector<32x128xf32>
    %97 = vector.extract_strided_slice %51 {offsets = [2, 0], sizes = [1, 128], strides = [1, 1]} : vector<8x128xf32> to vector<1x128xf32>
    %98 = vector.broadcast %97 : vector<1x128xf32> to vector<32x128xf32>
    %99 = arith.addf %96, %98 : vector<32x128xf32>
    %100 = arith.negf %99 : vector<32x128xf32>
    %101 = math.exp %100 : vector<32x128xf32>
    %cst_62 = arith.constant 1.000000e+00 : f32
    %102 = vector.broadcast %cst_62 : f32 to vector<32x128xf32>
    %103 = arith.addf %102, %101 : vector<32x128xf32>
    %104 = arith.divf %102, %103 : vector<32x128xf32>
    %105 = arith.mulf %99, %104 : vector<32x128xf32>
    %c6 = arith.constant 6 : index
    %c0_63 = arith.constant 0 : index
    %c0_64 = arith.constant 0 : index
    %106 = vector.load %arg11[%c6, %c0_63, %c0_64] : memref<20x128x128xbf16, #tpu.memory_space<vmem>>, vector<1x128x128xbf16>
    %107 = vector.shape_cast %106 : vector<1x128x128xbf16> to vector<128x128xbf16>
    %108 = arith.truncf %105 : vector<32x128xf32> to vector<32x128xbf16>
    %cst_65 = arith.constant dense<0.000000e+00> : vector<32x128xf32>
    %109 = tpu.matmul %108, %107, %cst_65 {dimension_numbers = #tpu.dot_dimension_numbers<[1], [0], [0], [1], [0, 0, 1, 1], [], []>} : vector<32x128xbf16>, vector<128x128xbf16>, vector<32x128xf32> -> vector<32x128xf32>
    %110 = vector.extract_strided_slice %51 {offsets = [3, 0], sizes = [1, 128], strides = [1, 1]} : vector<8x128xf32> to vector<1x128xf32>
    %111 = vector.broadcast %110 : vector<1x128xf32> to vector<32x128xf32>
    %112 = arith.addf %109, %111 : vector<32x128xf32>
    %113 = arith.mulf %57, %112 : vector<32x128xf32>
    %114 = arith.truncf %113 : vector<32x128xf32> to vector<32x128xbf16>
    %cst_66 = arith.constant dense<0.000000e+00> : vector<16x128xf32>
    %115 = tpu.matmul %48, %114, %cst_66 {dimension_numbers = #tpu.dot_dimension_numbers<[1], [0], [0], [1], [0, 0, 1, 1], [], []>} : vector<16x32xbf16>, vector<32x128xbf16>, vector<16x128xf32> -> vector<16x128xf32>
    %cst_67 = arith.constant 3.125000e-02 : f32
    %116 = vector.broadcast %cst_67 : f32 to vector<16x128xf32>
    %117 = arith.mulf %115, %116 : vector<16x128xf32>
    %118 = arith.addf %8, %117 : vector<16x128xf32>
    %119 = arith.truncf %92 : vector<32x128xf32> to vector<32x128xbf16>
    %cst_68 = arith.constant dense<0.000000e+00> : vector<16x128xf32>
    %120 = tpu.matmul %48, %119, %cst_68 {dimension_numbers = #tpu.dot_dimension_numbers<[1], [0], [0], [1], [0, 0, 1, 1], [], []>} : vector<16x32xbf16>, vector<32x128xbf16>, vector<16x128xf32> -> vector<16x128xf32>
    %c7 = arith.constant 7 : index
    %c0_69 = arith.constant 0 : index
    %c0_70 = arith.constant 0 : index
    %121 = vector.load %arg11[%c7, %c0_69, %c0_70] : memref<20x128x128xbf16, #tpu.memory_space<vmem>>, vector<1x128x128xbf16>
    %122 = vector.shape_cast %121 : vector<1x128x128xbf16> to vector<128x128xbf16>
    %123 = arith.truncf %45 : vector<16x128xf32> to vector<16x128xbf16>
    %cst_71 = arith.constant dense<0.000000e+00> : vector<16x128xf32>
    %124 = tpu.matmul %123, %122, %cst_71 {dimension_numbers = #tpu.dot_dimension_numbers<[1], [0], [0], [1], [0, 0, 1, 1], [], []>} : vector<16x128xbf16>, vector<128x128xbf16>, vector<16x128xf32> -> vector<16x128xf32>
    %c8 = arith.constant 8 : index
    %c0_72 = arith.constant 0 : index
    %c0_73 = arith.constant 0 : index
    %125 = vector.load %arg11[%c8, %c0_72, %c0_73] : memref<20x128x128xbf16, #tpu.memory_space<vmem>>, vector<1x128x128xbf16>
    %126 = vector.shape_cast %125 : vector<1x128x128xbf16> to vector<128x128xbf16>
    %127 = arith.truncf %120 : vector<16x128xf32> to vector<16x128xbf16>
    %cst_74 = arith.constant dense<0.000000e+00> : vector<16x128xf32>
    %128 = tpu.matmul %127, %126, %cst_74 {dimension_numbers = #tpu.dot_dimension_numbers<[1], [0], [0], [1], [0, 0, 1, 1], [], []>} : vector<16x128xbf16>, vector<128x128xbf16>, vector<16x128xf32> -> vector<16x128xf32>
    %129 = arith.addf %124, %128 : vector<16x128xf32>
    %130 = vector.extract_strided_slice %51 {offsets = [4, 0], sizes = [1, 128], strides = [1, 1]} : vector<8x128xf32> to vector<1x128xf32>
    %131 = vector.broadcast %130 : vector<1x128xf32> to vector<16x128xf32>
    %132 = arith.addf %129, %131 : vector<16x128xf32>
    %133 = arith.negf %132 : vector<16x128xf32>
    %134 = math.exp %133 : vector<16x128xf32>
    %cst_75 = arith.constant 1.000000e+00 : f32
    %135 = vector.broadcast %cst_75 : f32 to vector<16x128xf32>
    %136 = arith.addf %135, %134 : vector<16x128xf32>
    %137 = arith.divf %135, %136 : vector<16x128xf32>
    %138 = arith.mulf %132, %137 : vector<16x128xf32>
    %c9 = arith.constant 9 : index
    %c0_76 = arith.constant 0 : index
    %c0_77 = arith.constant 0 : index
    %139 = vector.load %arg11[%c9, %c0_76, %c0_77] : memref<20x128x128xbf16, #tpu.memory_space<vmem>>, vector<1x128x128xbf16>
    %140 = vector.shape_cast %139 : vector<1x128x128xbf16> to vector<128x128xbf16>
    %141 = arith.truncf %138 : vector<16x128xf32> to vector<16x128xbf16>
    %cst_78 = arith.constant dense<0.000000e+00> : vector<16x128xf32>
    %142 = tpu.matmul %141, %140, %cst_78 {dimension_numbers = #tpu.dot_dimension_numbers<[1], [0], [0], [1], [0, 0, 1, 1], [], []>} : vector<16x128xbf16>, vector<128x128xbf16>, vector<16x128xf32> -> vector<16x128xf32>
    %143 = arith.addf %45, %142 : vector<16x128xf32>
    %144 = vector.extract_strided_slice %51 {offsets = [5, 0], sizes = [1, 128], strides = [1, 1]} : vector<8x128xf32> to vector<1x128xf32>
    %145 = vector.broadcast %144 : vector<1x128xf32> to vector<16x128xf32>
    %146 = arith.addf %143, %145 : vector<16x128xf32>
    %c1_79 = arith.constant 1 : index
    %c0_80 = arith.constant 0 : index
    %c0_81 = arith.constant 0 : index
    %147 = vector.load %arg12[%c1_79, %c0_80, %c0_81] : memref<2x8x128xf32, #tpu.memory_space<vmem>>, vector<1x8x128xf32>
    %148 = vector.shape_cast %147 : vector<1x8x128xf32> to vector<8x128xf32>
    %149 = arith.truncf %146 : vector<16x128xf32> to vector<16x128xbf16>
    %cst_82 = arith.constant dense<0.000000e+00> : vector<64x128xf32>
    %150 = tpu.matmul %46, %149, %cst_82 {dimension_numbers = #tpu.dot_dimension_numbers<[1], [0], [0], [1], [0, 0, 1, 1], [], []>} : vector<64x16xbf16>, vector<16x128xbf16>, vector<64x128xf32> -> vector<64x128xf32>
    %151 = vector.extract_strided_slice %150 {offsets = [0, 0], sizes = [32, 128], strides = [1, 1]} : vector<64x128xf32> to vector<32x128xf32>
    %152 = vector.extract_strided_slice %150 {offsets = [32, 0], sizes = [32, 128], strides = [1, 1]} : vector<64x128xf32> to vector<32x128xf32>
    %153 = arith.truncf %118 : vector<16x128xf32> to vector<16x128xbf16>
    %cst_83 = arith.constant dense<0.000000e+00> : vector<32x128xf32>
    %154 = tpu.matmul %47, %153, %cst_83 {dimension_numbers = #tpu.dot_dimension_numbers<[1], [0], [0], [1], [0, 0, 1, 1], [], []>} : vector<32x16xbf16>, vector<16x128xbf16>, vector<32x128xf32> -> vector<32x128xf32>
    %c10 = arith.constant 10 : index
    %c0_84 = arith.constant 0 : index
    %c0_85 = arith.constant 0 : index
    %155 = vector.load %arg11[%c10, %c0_84, %c0_85] : memref<20x128x128xbf16, #tpu.memory_space<vmem>>, vector<1x128x128xbf16>
    %156 = vector.shape_cast %155 : vector<1x128x128xbf16> to vector<128x128xbf16>
    %157 = arith.truncf %151 : vector<32x128xf32> to vector<32x128xbf16>
    %cst_86 = arith.constant dense<0.000000e+00> : vector<32x128xf32>
    %158 = tpu.matmul %157, %156, %cst_86 {dimension_numbers = #tpu.dot_dimension_numbers<[1], [0], [0], [1], [0, 0, 1, 1], [], []>} : vector<32x128xbf16>, vector<128x128xbf16>, vector<32x128xf32> -> vector<32x128xf32>
    %c11 = arith.constant 11 : index
    %c0_87 = arith.constant 0 : index
    %c0_88 = arith.constant 0 : index
    %159 = vector.load %arg11[%c11, %c0_87, %c0_88] : memref<20x128x128xbf16, #tpu.memory_space<vmem>>, vector<1x128x128xbf16>
    %160 = vector.shape_cast %159 : vector<1x128x128xbf16> to vector<128x128xbf16>
    %161 = arith.truncf %152 : vector<32x128xf32> to vector<32x128xbf16>
    %cst_89 = arith.constant dense<0.000000e+00> : vector<32x128xf32>
    %162 = tpu.matmul %161, %160, %cst_89 {dimension_numbers = #tpu.dot_dimension_numbers<[1], [0], [0], [1], [0, 0, 1, 1], [], []>} : vector<32x128xbf16>, vector<128x128xbf16>, vector<32x128xf32> -> vector<32x128xf32>
    %163 = arith.addf %158, %162 : vector<32x128xf32>
    %164 = arith.mulf %154, %154 : vector<32x128xf32>
    %c12 = arith.constant 12 : index
    %c0_90 = arith.constant 0 : index
    %c0_91 = arith.constant 0 : index
    %165 = vector.load %arg11[%c12, %c0_90, %c0_91] : memref<20x128x128xbf16, #tpu.memory_space<vmem>>, vector<1x128x128xbf16>
    %166 = vector.shape_cast %165 : vector<1x128x128xbf16> to vector<128x128xbf16>
    %167 = arith.truncf %164 : vector<32x128xf32> to vector<32x128xbf16>
    %cst_92 = arith.constant dense<0.000000e+00> : vector<32x128xf32>
    %168 = tpu.matmul %167, %166, %cst_92 {dimension_numbers = #tpu.dot_dimension_numbers<[1], [0], [0], [1], [0, 0, 1, 1], [], []>} : vector<32x128xbf16>, vector<128x128xbf16>, vector<32x128xf32> -> vector<32x128xf32>
    %169 = arith.addf %163, %168 : vector<32x128xf32>
    %c13 = arith.constant 13 : index
    %c0_93 = arith.constant 0 : index
    %c0_94 = arith.constant 0 : index
    %170 = vector.load %arg11[%c13, %c0_93, %c0_94] : memref<20x128x128xbf16, #tpu.memory_space<vmem>>, vector<1x128x128xbf16>
    %171 = vector.shape_cast %170 : vector<1x128x128xbf16> to vector<128x128xbf16>
    %cst_95 = arith.constant dense<0.000000e+00> : vector<32x128xf32>
    %172 = tpu.matmul %49, %171, %cst_95 {dimension_numbers = #tpu.dot_dimension_numbers<[1], [0], [0], [1], [0, 0, 1, 1], [], []>} : vector<32x128xbf16>, vector<128x128xbf16>, vector<32x128xf32> -> vector<32x128xf32>
    %173 = arith.addf %169, %172 : vector<32x128xf32>
    %174 = vector.extract_strided_slice %148 {offsets = [0, 0], sizes = [1, 128], strides = [1, 1]} : vector<8x128xf32> to vector<1x128xf32>
    %175 = vector.broadcast %174 : vector<1x128xf32> to vector<32x128xf32>
    %176 = arith.addf %173, %175 : vector<32x128xf32>
    %177 = arith.negf %176 : vector<32x128xf32>
    %178 = math.exp %177 : vector<32x128xf32>
    %cst_96 = arith.constant 1.000000e+00 : f32
    %179 = vector.broadcast %cst_96 : f32 to vector<32x128xf32>
    %180 = arith.addf %179, %178 : vector<32x128xf32>
    %181 = arith.divf %179, %180 : vector<32x128xf32>
    %182 = arith.mulf %176, %181 : vector<32x128xf32>
    %c14 = arith.constant 14 : index
    %c0_97 = arith.constant 0 : index
    %c0_98 = arith.constant 0 : index
    %183 = vector.load %arg11[%c14, %c0_97, %c0_98] : memref<20x128x128xbf16, #tpu.memory_space<vmem>>, vector<1x128x128xbf16>
    %184 = vector.shape_cast %183 : vector<1x128x128xbf16> to vector<128x128xbf16>
    %185 = arith.truncf %182 : vector<32x128xf32> to vector<32x128xbf16>
    %cst_99 = arith.constant dense<0.000000e+00> : vector<32x128xf32>
    %186 = tpu.matmul %185, %184, %cst_99 {dimension_numbers = #tpu.dot_dimension_numbers<[1], [0], [0], [1], [0, 0, 1, 1], [], []>} : vector<32x128xbf16>, vector<128x128xbf16>, vector<32x128xf32> -> vector<32x128xf32>
    %187 = vector.extract_strided_slice %148 {offsets = [1, 0], sizes = [1, 128], strides = [1, 1]} : vector<8x128xf32> to vector<1x128xf32>
    %188 = vector.broadcast %187 : vector<1x128xf32> to vector<32x128xf32>
    %189 = arith.addf %186, %188 : vector<32x128xf32>
    %c15 = arith.constant 15 : index
    %c0_100 = arith.constant 0 : index
    %c0_101 = arith.constant 0 : index
    %190 = vector.load %arg11[%c15, %c0_100, %c0_101] : memref<20x128x128xbf16, #tpu.memory_space<vmem>>, vector<1x128x128xbf16>
    %191 = vector.shape_cast %190 : vector<1x128x128xbf16> to vector<128x128xbf16>
    %192 = arith.truncf %189 : vector<32x128xf32> to vector<32x128xbf16>
    %cst_102 = arith.constant dense<0.000000e+00> : vector<32x128xf32>
    %193 = tpu.matmul %192, %191, %cst_102 {dimension_numbers = #tpu.dot_dimension_numbers<[1], [0], [0], [1], [0, 0, 1, 1], [], []>} : vector<32x128xbf16>, vector<128x128xbf16>, vector<32x128xf32> -> vector<32x128xf32>
    %194 = vector.extract_strided_slice %148 {offsets = [2, 0], sizes = [1, 128], strides = [1, 1]} : vector<8x128xf32> to vector<1x128xf32>
    %195 = vector.broadcast %194 : vector<1x128xf32> to vector<32x128xf32>
    %196 = arith.addf %193, %195 : vector<32x128xf32>
    %197 = arith.negf %196 : vector<32x128xf32>
    %198 = math.exp %197 : vector<32x128xf32>
    %cst_103 = arith.constant 1.000000e+00 : f32
    %199 = vector.broadcast %cst_103 : f32 to vector<32x128xf32>
    %200 = arith.addf %199, %198 : vector<32x128xf32>
    %201 = arith.divf %199, %200 : vector<32x128xf32>
    %202 = arith.mulf %196, %201 : vector<32x128xf32>
    %c16 = arith.constant 16 : index
    %c0_104 = arith.constant 0 : index
    %c0_105 = arith.constant 0 : index
    %203 = vector.load %arg11[%c16, %c0_104, %c0_105] : memref<20x128x128xbf16, #tpu.memory_space<vmem>>, vector<1x128x128xbf16>
    %204 = vector.shape_cast %203 : vector<1x128x128xbf16> to vector<128x128xbf16>
    %205 = arith.truncf %202 : vector<32x128xf32> to vector<32x128xbf16>
    %cst_106 = arith.constant dense<0.000000e+00> : vector<32x128xf32>
    %206 = tpu.matmul %205, %204, %cst_106 {dimension_numbers = #tpu.dot_dimension_numbers<[1], [0], [0], [1], [0, 0, 1, 1], [], []>} : vector<32x128xbf16>, vector<128x128xbf16>, vector<32x128xf32> -> vector<32x128xf32>
    %207 = vector.extract_strided_slice %148 {offsets = [3, 0], sizes = [1, 128], strides = [1, 1]} : vector<8x128xf32> to vector<1x128xf32>
    %208 = vector.broadcast %207 : vector<1x128xf32> to vector<32x128xf32>
    %209 = arith.addf %206, %208 : vector<32x128xf32>
    %210 = arith.mulf %154, %209 : vector<32x128xf32>
    %211 = arith.truncf %210 : vector<32x128xf32> to vector<32x128xbf16>
    %cst_107 = arith.constant dense<0.000000e+00> : vector<16x128xf32>
    %212 = tpu.matmul %48, %211, %cst_107 {dimension_numbers = #tpu.dot_dimension_numbers<[1], [0], [0], [1], [0, 0, 1, 1], [], []>} : vector<16x32xbf16>, vector<32x128xbf16>, vector<16x128xf32> -> vector<16x128xf32>
    %cst_108 = arith.constant 3.125000e-02 : f32
    %213 = vector.broadcast %cst_108 : f32 to vector<16x128xf32>
    %214 = arith.mulf %212, %213 : vector<16x128xf32>
    %215 = arith.addf %118, %214 : vector<16x128xf32>
    %c0_109 = arith.constant 0 : index
    %c0_110 = arith.constant 0 : index
    %216 = vector.load %arg13[%c0_109, %c0_110] : memref<16x128xf32, #tpu.memory_space<vmem>>, vector<16x128xf32>
    tpu.vector_store %arg13[%c0_109, %c0_110], %215 {strides = array<i32>} : memref<16x128xf32, #tpu.memory_space<vmem>>, vector<16x128xf32>,
    return
  }
}

</mosaic_0001>

<bundles_post_ra>
// kernel: diffusion_step.1
= control target key start
LH: loop header
LB: loop body
LE: loop exit
PB: predicated region body
PF: predicated region fallthrough
CT: control target
= control target key end

     0   :  { %20 = vsyncpa [#allocation4], 0  ;;  %s4893_s0 = inlined_call_operand.vmem [shape: f32[2], index: 0, kind: input, shape index: {}]   ;;  %s4894_s1 = inlined_call_operand.vmem [shape: f32[8,128], index: 1, kind: input, shape index: {}]   ;;  %s4895_s2 = inlined_call_operand.vmem [shape: bf16[16,128], index: 2, kind: input, shape index: {}]   ;;  %s4896_s3 = inlined_call_operand.vmem [shape: f32[16,128], index: 3, kind: input, shape index: {}]   ;;  %s4897_s4 = inlined_call_operand.vmem [shape: f32[16,128], index: 4, kind: input, shape index: {}]   ;;  %s4898_s5 = inlined_call_operand.vmem [shape: bf16[32,128], index: 5, kind: input, shape index: {}]   ;;  %s4899_s6 = inlined_call_operand.vmem [shape: bf16[64,16], index: 6, kind: input, shape index: {}]   ;;  %s4900_s7 = inlined_call_operand.vmem [shape: bf16[32,16], index: 7, kind: input, shape index: {}]   ;;  %s4901_s8 = inlined_call_operand.vmem [shape: bf16[16,32], index: 8, kind: input, shape index: {}]   ;;  %s4902_s9 = inlined_call_operand.hbm [shape: bf16[4,128,128], index: 9, kind: input, shape index: {}]   ;;  %s4903_s10 = inlined_call_operand.vmem [shape: f32[8,128], index: 10, kind: input, shape index: {}]   ;;  %s4904_s11 = inlined_call_operand.hbm [shape: bf16[20,128,128], index: 11, kind: input, shape index: {}]   ;;  %s4905_s12 = inlined_call_operand.vmem [shape: f32[2,8,128], index: 12, kind: input, shape index: {}]   ;;  %s4906_s13 = inlined_call_operand.vmem [shape: f32[16,128], index: 13, kind: output, shape index: {0}]   ;;  %s4907_s14 = inlined_call_operand.vmem [shape: f32[16,128], index: 14, kind: output, shape index: {1}]  }
   0x1   :  { %21 = vsyncpa [#allocation3], 0  ;;  %s29_s15 = sshll.u32 %s4893_s0, 4  ;;  %s30_s15 = int_to_ptr.vmem [resolvable:$true] %s29_s15 }
   0x2   :  { %22 = vsyncpa [#allocation7], 0  ;;  %s4388_s16 = scalar_lea.vmem %s30_s15, 16  ;;  %p4393_p1 = scmp.lt.s32.totalorder %s30_s15, %s30_s15 }
   0x3   :  { %p4389_p0 = scmp.ne.s32.totalorder %s30_s15, %s4388_s16  ;;  %p4394_p2 = scmp.lt.s32.totalorder %s4388_s16, %s4388_s16 }
   0x5   :  { %p4395_p3 = por %p4394_p2, %p4393_p1 }
   0x7   :  { %p4396_p4 = pnand %p4395_p3, %p4389_p0 }
   0x9   :  { %4399 = shalt.err (!%p4396_p4)
}
   0xa   :  { %s4450_s17 = smov [#allocation2]   ;;  %s4451_s18 = smov [#allocation5]  }
   0xb   :  { %32 = dma.vmem_to_smem %s30_s15, 16, %s4450_s17, [#allocation4]  }
   0xc   :  { %s54_s19 = sshll.u32 %s4451_s18, 4  ;;  %s4400_s22 = scalar_lea.hbm %s4902_s9, 4096  ;;  %s55_s19 = int_to_ptr.vmem [resolvable:$true] %s54_s19 }
   0xd   :  { %p4401_p5 = scmp.ne.s32.totalorder %s4902_s9, %s4400_s22  ;;  %p4404_p6 = scmp.lt.u32.totalorder %s4400_s22, %s4902_s9 }
   0xf   :  { %p4406_p7 = pnand %p4404_p6, %p4401_p5 }
  0x11   :  { %4409 = shalt.err (!%p4406_p7)
}
  0x12   :  { %s4410_s26 = scalar_lea.vmem %s55_s19, 4096  ;;  %p4415_p9 = scmp.lt.s32.totalorder %s55_s19, %s55_s19 }
  0x13   :  { %p4411_p8 = scmp.ne.s32.totalorder %s55_s19, %s4410_s26  ;;  %p4416_p10 = scmp.lt.s32.totalorder %s4410_s26, %s4410_s26 }
  0x15   :  { %p4417_p11 = por %p4416_p10, %p4415_p9 }
  0x17   :  { %p4418_p12 = pnand %p4417_p11, %p4411_p8 }
  0x19   :  { %4421 = shalt.err (!%p4418_p12)
}
  0x1a   :  { %s4452_s27 = smov 64   ;;  %s4453_s28 = smov 4  }
  0x1b   :  { %60 = dma.hbm_to_vmem [thread:$0]  %s4902_s9, 4096, %s55_s19, [#allocation3], %s4452_s27, %s4452_s27, %s4453_s28  }
  0x1c   :  { %s4454_s15 = smov [#allocation6]   ;;  %s4422_s20 = scalar_lea.hbm %s4904_s11, 20480 }
  0x1d   :  { %s68_s16 = sshll.u32 %s4454_s15, 4  ;;  %p4423_p13 = scmp.ne.s32.totalorder %s4904_s11, %s4422_s20  ;;  %s69_s16 = int_to_ptr.vmem [resolvable:$true] %s68_s16 }
  0x1e   :  { %p4426_p0 = scmp.lt.u32.totalorder %s4422_s20, %s4904_s11 }
  0x20   :  { %p4428_p1 = pnand %p4426_p0, %p4423_p13 }
  0x22   :  { %4431 = shalt.err (!%p4428_p1)
}
  0x23   :  { %s4432_s24 = scalar_lea.vmem %s69_s16, 20480  ;;  %p4437_p3 = scmp.lt.s32.totalorder %s69_s16, %s69_s16 }
  0x24   :  { %p4433_p2 = scmp.ne.s32.totalorder %s69_s16, %s4432_s24  ;;  %p4438_p4 = scmp.lt.s32.totalorder %s4432_s24, %s4432_s24 }
  0x26   :  { %p4439_p5 = por %p4438_p4, %p4437_p3 }
  0x28   :  { %p4440_p6 = pnand %p4439_p5, %p4433_p2 }
  0x2a   :  { %4443 = shalt.err (!%p4440_p6)
}
  0x2b   :  { %74 = dma.hbm_to_vmem [thread:$0]  %s4904_s11, 20480, %s69_s16, [#allocation7], %s4452_s27, %s4452_s27, %s4453_s28  }
  0x2c   :  { %4444 = dma.done.wait [#allocation4], 16  }
  0x2d   :  { %4445 = vsyncadd [#allocation4], 4294967280 }
  0x2e   :  { %4446 = dma.done.wait [#allocation3], 4096  }
  0x2f   :  { %4447 = vsyncadd [#allocation3], 4294963200 }
  0x30   :  { %4448 = dma.done.wait [#allocation7], 20480  }
  0x31   :  { %4449 = vsyncadd [#allocation7], 4294946816 }
  0x32   :  { %86 = sfence }
  0x33   :  { %v4133_v0 = vld [vmem:[#allocation5] sm:$0xff]   ;;  %v4455_v1 = vmov 0.0   ;;  %v4134_v2 = vld [vmem:[#allocation5 + $0x8] sm:$0xff]   ;;  %vm4456_vm0 = vmmov 0   ;;  %v4135_v3 = vld [vmem:[#allocation5 + $0x10] sm:$0xff]   ;;  %v123_v26 = vlaneseq  ;;  %vm602_vm1 = vcmask 130048  }
  0x34   :  { %3626 = vmatprep.subr.bf16.mxu0 %v4455_v1  ;;  %3646 = vmatprep.subr.bf16.mxu1 %v4455_v1  ;;  %v4136_v4 = vld [vmem:[#allocation5 + $0x18] sm:$0xff]   ;;  %v4137_v5 = vld [vmem:[#allocation5 + $0x20] sm:$0xff]   ;;  %v4138_v6 = vld [vmem:[#allocation5 + $0x28] sm:$0xff]   ;;  %s88_s29 = sld [smem:[#allocation2]]  ;;  %s3184_s30 = sld [smem:[#allocation2 + $0x1]]  ;;  %vm1666_vm2 = vcmask 261120  }
  0x35   :  { %3627 = vmatpush3.bf16.msra.mxu0 %v4133_v0  ;;  %3642 = vmatprep.mubr.msk.bf16.mxu0 %vm4456_vm0, %v4455_v1  ;;  %v4139_v7 = vld [vmem:[#allocation5 + $0x30] sm:$0xff]   ;;  %v4140_v8 = vld [vmem:[#allocation5 + $0x38] sm:$0xff]   ;;  %v105_v9 = vld [vmem:[%s4894_s1] sm:$0xff]  ;;  %v4593_v27 = vshrl.u32 %v123_v26, 7 }
  0x36   :  { %3628 = vmatprep.subr.bf16.mxu0 %v4455_v1  ;;  %3662 = vmatprep.mubr.msk.bf16.mxu1 %vm4456_vm0, %v4455_v1  ;;  %v122_v10 = vpack.c.bf16 %v105_v9, %v105_v9  ;;  %v4141_v11 = vld [vmem:[#allocation5 + $0x40] sm:$0xff]   ;;  %v4142_v12 = vld [vmem:[#allocation5 + $0x48] sm:$0xff]   ;;  %v4143_v13 = vld [vmem:[#allocation5 + $0x50] sm:$0xff]  }
  0x37   :  { %3647 = vmatpush3.bf16.msra.mxu1 %v4141_v11  ;;  %v4144_v14 = vld [vmem:[#allocation5 + $0x58] sm:$0xff]   ;;  %v4145_v15 = vld [vmem:[#allocation5 + $0x60] sm:$0xff]   ;;  %v4146_v16 = vld [vmem:[#allocation5 + $0x68] sm:$0xff]   ;;  %v4596_v28 = vsub.s32 0, %v4593_v27  ;;  %v4618_v52 = vsub.s32 1, %v4593_v27 }
  0x38   :  { %3648 = vmatprep.subr.bf16.mxu1 %v4455_v1  ;;  %v4147_v17 = vld [vmem:[#allocation5 + $0x70] sm:$0xff]   ;;  %v4148_v18 = vld [vmem:[#allocation5 + $0x78] sm:$0xff]   ;;  %v4150_v19 = vld [vmem:[#allocation5 + $0xc0] sm:$0xff]  }
  0x39   :  { %3629 = vmatpush3.bf16.msra.mxu0 %v4134_v2  ;;  %v4152_v20 = vld [vmem:[#allocation5 + $0xc8] sm:$0xff]   ;;  %v4154_v21 = vld [vmem:[#allocation5 + $0xd0] sm:$0xff]   ;;  %v4156_v22 = vld [vmem:[#allocation5 + $0xd8] sm:$0xff]  }
  0x3a   :  { %3630 = vmatprep.subr.bf16.mxu0 %v4455_v1  ;;  %v4158_v23 = vld [vmem:[#allocation5 + $0xe0] sm:$0xff]   ;;  %v4160_v24 = vld [vmem:[#allocation5 + $0xe8] sm:$0xff]   ;;  %v4162_v25 = vld [vmem:[#allocation5 + $0xf0] sm:$0xff]  }
  0x3b   :  { %3649 = vmatpush3.bf16.msra.mxu1 %v4142_v12  ;;  %v4601_v29 = vld [vmem:[%s4903_s10] sm:$0xff]  ;;  %v4151_v43 = vld [vmem:[#allocation5 + $0x88] sm:$0xff]   ;;  %v4153_v44 = vld [vmem:[#allocation5 + $0x90] sm:$0xff]  }
  0x3c   :  { %3650 = vmatprep.subr.bf16.mxu1 %v4455_v1  ;;  %v126_v30 = vrot.slane %v4601_v29, %v4596_v28  ;;  %v4149_v41 = vld [vmem:[#allocation5 + $0x80] sm:$0xff]   ;;  %v4155_v45 = vld [vmem:[#allocation5 + $0x98] sm:$0xff]   ;;  %v4159_v47 = vld [vmem:[#allocation5 + $0xa8] sm:$0xff]   ;;  %v243_v53 = vrot.slane %v4601_v29, %v4618_v52 }
  0x3d   :  { %3631 = vmatpush3.bf16.msra.mxu0 %v4135_v3  ;;  %v4157_v46 = vld [vmem:[#allocation5 + $0xa0] sm:$0xff]   ;;  %v4161_v48 = vld [vmem:[#allocation5 + $0xb0] sm:$0xff]   ;;  %v4163_v49 = vld [vmem:[#allocation5 + $0xb8] sm:$0xff]  }
  0x3e   :  { %3632 = vmatprep.subr.bf16.mxu0 %v4455_v1  ;;  %v4164_v50 = vld [vmem:[#allocation5 + $0xf8] sm:$0xff]   ;;  %v4165_v51 = vld [vmem:[%s4895_s2] sm:$0xff]  }
  0x3f   :  { %3651 = vmatpush3.bf16.msra.mxu1 %v4143_v13  ;;  %v4625_v0 = vld [vmem:[%s4899_s6] sm:$0xff]  }
  0x40   :  { %3652 = vmatprep.subr.bf16.mxu1 %v4455_v1  ;;  %v4170_v2 = vld [vmem:[%s4900_s7] sm:$0xff]  }
  0x41   :  { %3633 = vmatpush3.bf16.msra.mxu0 %v4136_v4  ;;  %v90_v3 = vld [vmem:[%s4896_s3] sm:$0xff]  ;;  %v91_v4 = vld [vmem:[%s4896_s3 + $0x8] sm:$0xff] }
  0x42   :  { %3634 = vmatprep.subr.bf16.mxu0 %v4455_v1 }
  0x43   :  { %3653 = vmatpush3.bf16.msra.mxu1 %v4144_v14 }
  0x44   :  { %3654 = vmatprep.subr.bf16.mxu1 %v4455_v1 }
  0x45   :  { %3635 = vmatpush3.bf16.msra.mxu0 %v4137_v5  ;;  %v95_v5 = vld [vmem:[%s4897_s4] sm:$0xff] }
  0x46   :  { %3636 = vmatprep.subr.bf16.mxu0 %v4455_v1 }
  0x47   :  { %3655 = vmatpush3.bf16.msra.mxu1 %v4145_v15 }
  0x48   :  { %3656 = vmatprep.subr.bf16.mxu1 %v4455_v1 }
  0x49   :  { %3637 = vmatpush3.bf16.msra.mxu0 %v4138_v6  ;;  %v96_v6 = vld [vmem:[%s4897_s4 + $0x8] sm:$0xff] }
  0x4a   :  { %3638 = vmatprep.subr.bf16.mxu0 %v4455_v1 }
  0x4b   :  { %3657 = vmatpush3.bf16.msra.mxu1 %v4146_v16  ;;  %v4662_v16 = vld [vmem:[%s4900_s7 + $0x8] sm:$0xff]  }
  0x4c   :  { %3658 = vmatprep.subr.bf16.mxu1 %v4455_v1 }
  0x4d   :  { %3639 = vmatpush3.bf16.msra.mxu0 %v4139_v7  ;;  %v92_v7 = vstv %s88_s29 }
  0x4e   :  { %3640 = vmatprep.subr.bf16.mxu0 %v4455_v1  ;;  %v93_v9 = vmul.f32 %v92_v7, %v90_v3 }
  0x4f   :  { %3659 = vmatpush3.bf16.msra.mxu1 %v4147_v17  ;;  %v4667_v17 = vsub.s32 2, %v4593_v27 }
  0x50   :  { %3660 = vmatprep.subr.bf16.mxu1 %v4455_v1 }
  0x51   :  { %3641 = vmatpush3.bf16.msra.mxu0 %v4140_v8  ;;  %v97_v8 = vstv %s3184_s30 }
  0x52   :  { %3666 = vmatprep.subr.bf16.mxu0 %v4455_v1  ;;  %v98_v11 = vmul.f32 %v97_v8, %v95_v5  ;;  %v99_v12 = vmul.f32 %v97_v8, %v96_v6  ;;  %v4182_v5 = vld [vmem:[#allocation6 + $0x10] sm:$0xff]   ;;  %v4183_v6 = vld [vmem:[#allocation6 + $0x18] sm:$0xff]   ;;  %v4185_v8 = vld [vmem:[#allocation6 + $0x28] sm:$0xff]  }
  0x53   :  { %3661 = vmatpush3.bf16.msra.mxu1 %v4148_v18 }
  0x54   :  { %3643 = vmatmul.mubr.bf16.vlgmr.msra.gmra.mrb[0].mxu0 %v122_v10  ;;  %3686 = vmatprep.subr.bf16.mxu1 %v4455_v1  ;;  %v94_v10 = vmul.f32 %v92_v7, %v91_v4  ;;  %v4645_v13 = vadd.f32 %v98_v11, %v93_v9  ;;  %v4181_v4 = vld [vmem:[#allocation6 + $0x8] sm:$0xff]   ;;  %v4184_v7 = vld [vmem:[#allocation6 + $0x20] sm:$0xff]   ;;  %v4186_v9 = vld [vmem:[#allocation6 + $0x30] sm:$0xff]  }
  0x55   :  { %3682 = vmatprep.mubr.msk.bf16.mxu0 %vm4456_vm0, %v4455_v1  ;;  %3667 = vmatpush3.bf16.msra.mxu0 %v4150_v19  ;;  %v4188_v11 = vld [vmem:[#allocation6 + $0x80] sm:$0xff]  }
  0x56   :  { %3668 = vmatprep.subr.bf16.mxu0 %v4455_v1  ;;  %v4647_v14 = vadd.f32 %v99_v12, %v94_v10  ;;  %102 = vst [vmem:[%s4907_s14] sm:$0xff] %v4645_v13  ;;  %v4187_v10 = vld [vmem:[#allocation6 + $0x38] sm:$0xff]   ;;  %v4189_v12 = vld [vmem:[#allocation6 + $0x88] sm:$0xff]  }
  0x58   :  { %103 = vst [vmem:[%s4907_s14 + $0x8] sm:$0xff] %v4647_v14  ;;  %v680_v15 = vpack.c.bf16 %v4647_v14, %v4645_v13 }
  0x59   :  { %3669 = vmatpush3.bf16.msra.mxu0 %v4152_v20  ;;  %v559_v20 = vrot.slane %v4601_v29, %v4667_v17  ;;  %v4684_v29 = vld [vmem:[%s4899_s6 + $0x8] sm:$0xff]  }
  0x5a   :  { %3670 = vmatprep.subr.bf16.mxu0 %v4455_v1 }
  0x5d   :  { %3671 = vmatpush3.bf16.msra.mxu0 %v4154_v21 }
  0x5e   :  { %3672 = vmatprep.subr.bf16.mxu0 %v4455_v1 }
  0x61   :  { %3673 = vmatpush3.bf16.msra.mxu0 %v4156_v22 }
  0x62   :  { %3674 = vmatprep.subr.bf16.mxu0 %v4455_v1 }
  0x65   :  { %3675 = vmatpush3.bf16.msra.mxu0 %v4158_v23 }
  0x66   :  { %3676 = vmatprep.subr.bf16.mxu0 %v4455_v1 }
  0x69   :  { %3677 = vmatpush3.bf16.msra.mxu0 %v4160_v24 }
  0x6a   :  { %3678 = vmatprep.subr.bf16.mxu0 %v4455_v1 }
  0x6d   :  { %3679 = vmatpush3.bf16.msra.mxu0 %v4162_v25 }
  0x6e   :  { %3680 = vmatprep.subr.bf16.mxu0 %v4455_v1 }
  0x71   :  { %3681 = vmatpush3.bf16.msra.mxu0 %v4164_v50 }
 0x127   :  { %v209_v31 = vpop.f32.mrb[0].mxu0 }
 0x128   :  { %v210_v32 = vadd.f32 %v209_v31, %v126_v30  ;;  %v3644_v33 = vpop.f32.mrb[1].mxu0 }
 0x129   :  { %v212_v34 = vpop.f32.mrb[2].mxu0  ;;  %v4690_v33 = vld [vmem:[%s4899_s6 + $0x10] sm:$0xff]  }
 0x12a   :  { %v3193_v35 = vmul.f32 -1.442695, %v210_v32  ;;  %v3645_v36 = vpop.f32.mrb[3].mxu0  ;;  %v4173_v34 = vld [vmem:[#allocation6 + $0x48] sm:$0xff]  }
 0x12b   :  { %v4699_v36 = vld [vmem:[%s4899_s6 + $0x18] sm:$0xff]  }
 0x12c   :  { %4311 = vpow2.f32 %v3193_v35  ;;  %v4174_v35 = vld [vmem:[#allocation6 + $0x50] sm:$0xff]  }
 0x136   :  { %v4312_v37 = vpop.eup %4311 }
 0x137   :  { %v218_v38 = vadd.f32 1.0, %v4312_v37  ;;  %v4175_v37 = vld [vmem:[#allocation6 + $0x58] sm:$0xff]  }
 0x139   :  { %4313 = vrcp.f32 %v218_v38  ;;  %v4176_v38 = vld [vmem:[#allocation6 + $0x60] sm:$0xff]  }
 0x143   :  { %v4314_v39 = vpop.eup %4313 }
 0x144   :  { %v221_v40 = vmul.f32 %v4314_v39, %v210_v32  ;;  %v4172_v32 = vld [vmem:[#allocation6 + $0x40] sm:$0xff]   ;;  %v4177_v39 = vld [vmem:[#allocation6 + $0x68] sm:$0xff]  }
 0x146   :  { %v239_v42 = vpack.c.bf16 %v221_v40, %v221_v40  ;;  %v4178_v40 = vld [vmem:[#allocation6 + $0x70] sm:$0xff]  }
 0x148   :  { %3663 = vmatmul.mubr.bf16.vlgmr.msra.gmra.mrb[0].mxu1 %v239_v42  ;;  %v4180_v42 = vld [vmem:[#allocation6] sm:$0xff]  }
 0x149   :  { %3687 = vmatpush3.bf16.msra.mxu1 %v4149_v41  ;;  %3702 = vmatprep.mubr.msk.bf16.mxu1 %vm4456_vm0, %v4455_v1  ;;  %v4179_v41 = vld [vmem:[#allocation6 + $0x78] sm:$0xff]  }
 0x14a   :  { %3688 = vmatprep.subr.bf16.mxu1 %v4455_v1 }
 0x14d   :  { %3689 = vmatpush3.bf16.msra.mxu1 %v4151_v43 }
 0x14e   :  { %3690 = vmatprep.subr.bf16.mxu1 %v4455_v1 }
 0x151   :  { %3691 = vmatpush3.bf16.msra.mxu1 %v4153_v44 }
 0x152   :  { %3692 = vmatprep.subr.bf16.mxu1 %v4455_v1 }
 0x155   :  { %3693 = vmatpush3.bf16.msra.mxu1 %v4155_v45 }
 0x156   :  { %3694 = vmatprep.subr.bf16.mxu1 %v4455_v1 }
 0x159   :  { %3695 = vmatpush3.bf16.msra.mxu1 %v4157_v46 }
 0x15a   :  { %3696 = vmatprep.subr.bf16.mxu1 %v4455_v1 }
 0x15d   :  { %3697 = vmatpush3.bf16.msra.mxu1 %v4159_v47 }
 0x15e   :  { %3698 = vmatprep.subr.bf16.mxu1 %v4455_v1 }
 0x161   :  { %3699 = vmatpush3.bf16.msra.mxu1 %v4161_v48 }
 0x162   :  { %3700 = vmatprep.subr.bf16.mxu1 %v4455_v1 }
 0x165   :  { %3701 = vmatpush3.bf16.msra.mxu1 %v4163_v49 }
 0x166   :  { %3716 = vmatprep.subr.bf16.mxu1 %v680_v15 }
 0x168   :  { %3703 = vmatmul.mubr.bf16.vlgmr.msra.gmra.mrb[4].mxu1 %v4165_v51 }
 0x169   :  { %3718 = vmatprep.mubr.msk.bf16.mxu1 %vm602_vm1, %v4170_v2  ;;  %3717 = vmatpush3.bf16.msra.mxu1 %v680_v15  ;;  %v4190_v15 = vld [vmem:[#allocation6 + $0x90] sm:$0xff]  }
 0x170   :  { %3719 = vmatmul.mubr.msk.bf16.vlgmr.msra.gmra.mrb[8].mxu1 %vm602_vm1, %v4662_v16 }
 0x21b   :  { %v326_v54 = vpop.f32.mrb[0].mxu1 }
 0x21c   :  { %v327_v55 = vadd.f32 %v326_v54, %v243_v53  ;;  %v3664_v56 = vpop.f32.mrb[1].mxu1 }
 0x21d   :  { %v329_v57 = vpop.f32.mrb[2].mxu1 }
 0x21e   :  { %v349_v58 = vpack.c.bf16 %v327_v55, %v327_v55  ;;  %v3665_v59 = vpop.f32.mrb[3].mxu1 }
 0x220   :  { %3683 = vmatmul.mubr.bf16.vlgmr.msra.gmra.mrb[4].mxu0 %v349_v58 }
 0x221   :  { %3708 = vmatprep.mubr.msk.bf16.mxu0 %vm602_vm1, %v4625_v0 }
 0x23b   :  { %v549_v60 = vpop.f32.mrb[4].mxu1 }
 0x23c   :  { %v3704_v61 = vpop.f32.mrb[5].mxu1 }
 0x23d   :  { %v552_v62 = vpop.f32.mrb[6].mxu1 }
 0x23e   :  { %v3705_v63 = vpop.f32.mrb[7].mxu1 }
 0x243   :  { %v4703_v43 = vpop.f32.mrb[8].mxu1 }
 0x244   :  { %v4707_v44 = vmul.f32 %v4703_v43, %v4703_v43  ;;  %v4709_v45 = vpop.f32.mrb[9].mxu1 }
 0x245   :  { %v977_v46 = vmul.f32 %v4709_v45, %v4709_v45  ;;  %v4713_v47 = vpop.f32.mrb[10].mxu1 }
 0x246   :  { %v4717_v48 = vmul.f32 %v4713_v47, %v4713_v47  ;;  %v4719_v49 = vpop.f32.mrb[11].mxu1 }
 0x247   :  { %v978_v50 = vmul.f32 %v4719_v49, %v4719_v49 }
 0x248   :  { %v999_v51 = vpack.c.bf16 %v4717_v48, %v4707_v44  ;;  %v4208_v44 = vld [vmem:[#allocation6 + $0x110] sm:$0xff]   ;;  %v4210_v48 = vld [vmem:[#allocation6 + $0x120] sm:$0xff]  }
 0x249   :  { %v998_v53 = vpack.c.bf16 %v978_v50, %v977_v46  ;;  %v4209_v46 = vld [vmem:[#allocation6 + $0x118] sm:$0xff]   ;;  %v4211_v50 = vld [vmem:[#allocation6 + $0x128] sm:$0xff]  }
 0x2f3   :  { %v432_v18 = vpop.f32.mrb[4].mxu0 }
 0x2f4   :  { %v460_v19 = vrot.slane %v432_v18, %v4596_v28  ;;  %v3684_v21 = vpop.f32.mrb[5].mxu0  ;;  %v4191_v18 = vld [vmem:[#allocation6 + $0x98] sm:$0xff]  }
 0x2f5   :  { %v435_v22 = vpop.f32.mrb[6].mxu0  ;;  %v4194_v21 = vld [vmem:[#allocation6 + $0xb0] sm:$0xff]  }
 0x2f6   :  { %v550_v23 = vadd.f32 %v549_v60, %v460_v19  ;;  %v553_v24 = vadd.f32 %v552_v62, %v460_v19  ;;  %v3685_v25 = vpop.f32.mrb[7].mxu0  ;;  %v4192_v19 = vld [vmem:[#allocation6 + $0xa0] sm:$0xff]   ;;  %v4195_v22 = vld [vmem:[#allocation6 + $0xb8] sm:$0xff]  }
 0x2f7   :  { %v4197_v25 = vld [vmem:[#allocation6 + $0xc8] sm:$0xff]  }
 0x2f8   :  { %v4672_v26 = vadd.f32 %v559_v20, %v550_v23  ;;  %v4674_v30 = vadd.f32 %v559_v20, %v553_v24  ;;  %v4193_v20 = vld [vmem:[#allocation6 + $0xa8] sm:$0xff]   ;;  %v4196_v23 = vld [vmem:[#allocation6 + $0xc0] sm:$0xff]  }
 0x2f9   :  { %v4728_v24 = vld [vmem:[%s4898_s5] sm:$0xff]  }
 0x2fa   :  { %v4678_v31 = vpack.c.bf16 %v4674_v30, %v4672_v26 }
 0x2fc   :  { %3706 = vmatprep.subr.bf16.mxu0 %v4678_v31 }
 0x2fd   :  { %3707 = vmatpush3.bf16.msra.mxu0 %v4678_v31 }
 0x2fe   :  { %3722 = vmatprep.subr.bf16.mxu0 %v4172_v32 }
 0x300   :  { %3709 = vmatmul.mubr.msk.bf16.vlgmr.msra.gmra.mrb[8].mxu0 %vm602_vm1, %v4684_v29 }
 0x301   :  { %3712 = vmatprep.mubr.msk.bf16.mxu0 %vm602_vm1, %v4690_v33  ;;  %3723 = vmatpush3.bf16.msra.mxu0 %v4172_v32  ;;  %v4198_v32 = vld [vmem:[#allocation6 + $0xd0] sm:$0xff]  }
 0x302   :  { %3724 = vmatprep.subr.bf16.mxu0 %v4173_v34 }
 0x305   :  { %3725 = vmatpush3.bf16.msra.mxu0 %v4173_v34  ;;  %v4199_v34 = vld [vmem:[#allocation6 + $0xd8] sm:$0xff]  }
 0x306   :  { %3726 = vmatprep.subr.bf16.mxu0 %v4174_v35 }
 0x308   :  { %3713 = vmatmul.mubr.msk.bf16.gmra.mrb[12].mxu0 %vm602_vm1, %v4699_v36 }
 0x309   :  { %3727 = vmatpush3.bf16.msra.mxu0 %v4174_v35  ;;  %v4200_v35 = vld [vmem:[#allocation6 + $0xe0] sm:$0xff]  }
 0x30a   :  { %3728 = vmatprep.subr.bf16.mxu0 %v4175_v37 }
 0x30d   :  { %3729 = vmatpush3.bf16.msra.mxu0 %v4175_v37  ;;  %v4201_v37 = vld [vmem:[#allocation6 + $0xe8] sm:$0xff]  }
 0x30e   :  { %3730 = vmatprep.subr.bf16.mxu0 %v4176_v38 }
 0x311   :  { %3731 = vmatpush3.bf16.msra.mxu0 %v4176_v38  ;;  %v4202_v38 = vld [vmem:[#allocation6 + $0xf0] sm:$0xff]  }
 0x312   :  { %3732 = vmatprep.subr.bf16.mxu0 %v4177_v39 }
 0x315   :  { %3733 = vmatpush3.bf16.msra.mxu0 %v4177_v39  ;;  %v4203_v39 = vld [vmem:[#allocation6 + $0xf8] sm:$0xff]  }
 0x316   :  { %3734 = vmatprep.subr.bf16.mxu0 %v4178_v40 }
 0x319   :  { %3735 = vmatpush3.bf16.msra.mxu0 %v4178_v40  ;;  %v4737_v40 = vld [vmem:[%s4898_s5 + $0x8] sm:$0xff]  }
 0x31a   :  { %3736 = vmatprep.subr.bf16.mxu0 %v4179_v41 }
 0x31d   :  { %3737 = vmatpush3.bf16.msra.mxu0 %v4179_v41  ;;  %v4206_v41 = vld [vmem:[#allocation6 + $0x100] sm:$0xff]  }
 0x31e   :  { %3742 = vmatprep.subr.bf16.mxu0 %v4180_v42  ;;  %3802 = vmatprep.subr.bf16.mxu1 %v4206_v41 }
 0x31f   :  { %3803 = vmatpush3.bf16.msra.mxu1 %v4206_v41  ;;  %v4217_v41 = vld [vmem:[#allocation6 + $0x158] sm:$0xff]  }
 0x3d3   :  { %v3710_v54 = vpop.f32.mrb[8].mxu0 }
 0x3d4   :  { %v649_v55 = vpop.f32.mrb[9].mxu0 }
 0x3d5   :  { %v3711_v56 = vpop.f32.mrb[10].mxu0 }
 0x3d6   :  { %v763_v57 = vpack.c.bf16 %v3711_v56, %v3710_v54  ;;  %v652_v58 = vpop.f32.mrb[11].mxu0  ;;  %v4214_v54 = vld [vmem:[#allocation6 + $0x140] sm:$0xff]  }
 0x3d7   :  { %v762_v59 = vpack.c.bf16 %v652_v58, %v649_v55  ;;  %v4746_v55 = vld [vmem:[%s4905_s12] sm:$0xff] }
 0x3d8   :  { %v1234_v56 = vrot.slane %v4746_v55, %v4596_v28 }
 0x3db   :  { %v3714_v60 = vpop.f32.mrb[12].mxu0 }
 0x3dc   :  { %v665_v61 = vpop.f32.mrb[13].mxu0 }
 0x3dd   :  { %v3715_v62 = vpop.f32.mrb[14].mxu0 }
 0x3de   :  { %v782_v63 = vpack.c.bf16 %v3715_v62, %v3714_v60  ;;  %v668_v2 = vpop.f32.mrb[15].mxu0 }
 0x3df   :  { %v781_v3 = vpack.c.bf16 %v668_v2, %v665_v61 }
 0x3e1   :  { %3738 = vmatprep.mubr.bf16.mxu0 %v781_v3 }
 0x3e2   :  { %3739 = vmatmul.mubr.bf16.vlgmr.msra.gmra.mrb[16].mxu0 %v782_v63 }
 0x3e3   :  { %3743 = vmatpush3.bf16.msra.mxu0 %v4180_v42  ;;  %3758 = vmatprep.mubr.bf16.mxu0 %v762_v59  ;;  %v4207_v42 = vld [vmem:[#allocation6 + $0x108] sm:$0xff]  }
 0x3e4   :  { %3744 = vmatprep.subr.bf16.mxu0 %v4181_v4  ;;  %3804 = vmatprep.subr.bf16.mxu1 %v4207_v42 }
 0x3e5   :  { %3805 = vmatpush3.bf16.msra.mxu1 %v4207_v42  ;;  %v4218_v42 = vld [vmem:[#allocation6 + $0x160] sm:$0xff]  }
 0x3e6   :  { %3806 = vmatprep.subr.bf16.mxu1 %v4208_v44 }
 0x3e7   :  { %3745 = vmatpush3.bf16.msra.mxu0 %v4181_v4 }
 0x3e8   :  { %3746 = vmatprep.subr.bf16.mxu0 %v4182_v5 }
 0x3e9   :  { %3807 = vmatpush3.bf16.msra.mxu1 %v4208_v44  ;;  %v4219_v44 = vld [vmem:[#allocation6 + $0x168] sm:$0xff]  }
 0x3ea   :  { %3808 = vmatprep.subr.bf16.mxu1 %v4209_v46 }
 0x3eb   :  { %3747 = vmatpush3.bf16.msra.mxu0 %v4182_v5 }
 0x3ec   :  { %3748 = vmatprep.subr.bf16.mxu0 %v4183_v6 }
 0x3ed   :  { %3809 = vmatpush3.bf16.msra.mxu1 %v4209_v46  ;;  %v4220_v46 = vld [vmem:[#allocation6 + $0x170] sm:$0xff]  }
 0x3ee   :  { %3810 = vmatprep.subr.bf16.mxu1 %v4210_v48 }
 0x3ef   :  { %3749 = vmatpush3.bf16.msra.mxu0 %v4183_v6 }
 0x3f0   :  { %3750 = vmatprep.subr.bf16.mxu0 %v4184_v7 }
 0x3f1   :  { %3811 = vmatpush3.bf16.msra.mxu1 %v4210_v48  ;;  %v4221_v48 = vld [vmem:[#allocation6 + $0x178] sm:$0xff]  }
 0x3f2   :  { %3812 = vmatprep.subr.bf16.mxu1 %v4211_v50 }
 0x3f3   :  { %3751 = vmatpush3.bf16.msra.mxu0 %v4184_v7 }
 0x3f4   :  { %3752 = vmatprep.subr.bf16.mxu0 %v4185_v8 }
 0x3f5   :  { %3813 = vmatpush3.bf16.msra.mxu1 %v4211_v50  ;;  %v1289_v50 = vrot.slane %v4746_v55, %v4618_v52 }
 0x3f7   :  { %3753 = vmatpush3.bf16.msra.mxu0 %v4185_v8 }
 0x3f8   :  { %3754 = vmatprep.subr.bf16.mxu0 %v4186_v9 }
 0x3fb   :  { %3755 = vmatpush3.bf16.msra.mxu0 %v4186_v9 }
 0x3fc   :  { %3756 = vmatprep.subr.bf16.mxu0 %v4187_v10 }
 0x3ff   :  { %3757 = vmatpush3.bf16.msra.mxu0 %v4187_v10 }
 0x400   :  { %3762 = vmatprep.subr.bf16.mxu0 %v4188_v11 }
 0x402   :  { %3759 = vmatmul.mubr.bf16.vlgmr.msra.gmra.mrb[16].mxu0 %v763_v57 }
 0x403   :  { %3763 = vmatpush3.bf16.msra.mxu0 %v4188_v11  ;;  %3778 = vmatprep.mubr.bf16.mxu0 %v998_v53  ;;  %v4213_v53 = vld [vmem:[#allocation6 + $0x138] sm:$0xff]  }
 0x404   :  { %3764 = vmatprep.subr.bf16.mxu0 %v4189_v12 }
 0x407   :  { %3765 = vmatpush3.bf16.msra.mxu0 %v4189_v12 }
 0x408   :  { %3766 = vmatprep.subr.bf16.mxu0 %v4190_v15 }
 0x40b   :  { %3767 = vmatpush3.bf16.msra.mxu0 %v4190_v15 }
 0x40c   :  { %3768 = vmatprep.subr.bf16.mxu0 %v4191_v18 }
 0x40f   :  { %3769 = vmatpush3.bf16.msra.mxu0 %v4191_v18 }
 0x410   :  { %3770 = vmatprep.subr.bf16.mxu0 %v4192_v19 }
 0x413   :  { %3771 = vmatpush3.bf16.msra.mxu0 %v4192_v19 }
 0x414   :  { %3772 = vmatprep.subr.bf16.mxu0 %v4193_v20 }
 0x417   :  { %3773 = vmatpush3.bf16.msra.mxu0 %v4193_v20 }
 0x418   :  { %3774 = vmatprep.subr.bf16.mxu0 %v4194_v21 }
 0x41b   :  { %3775 = vmatpush3.bf16.msra.mxu0 %v4194_v21 }
 0x41c   :  { %3776 = vmatprep.subr.bf16.mxu0 %v4195_v22 }
 0x41f   :  { %3777 = vmatpush3.bf16.msra.mxu0 %v4195_v22 }
 0x420   :  { %3782 = vmatprep.subr.bf16.mxu0 %v4196_v23 }
 0x422   :  { %3779 = vmatmul.mubr.bf16.vlgmr.msra.gmra.mrb[16].mxu0 %v999_v51  ;;  %v4212_v51 = vld [vmem:[#allocation6 + $0x130] sm:$0xff]  }
 0x423   :  { %3783 = vmatpush3.bf16.msra.mxu0 %v4196_v23  ;;  %3798 = vmatprep.mubr.bf16.mxu0 %v4728_v24 }
 0x424   :  { %3784 = vmatprep.subr.bf16.mxu0 %v4197_v25  ;;  %3814 = vmatprep.subr.bf16.mxu1 %v4212_v51 }
 0x425   :  { %3815 = vmatpush3.bf16.msra.mxu1 %v4212_v51 }
 0x426   :  { %3816 = vmatprep.subr.bf16.mxu1 %v4213_v53 }
 0x427   :  { %3785 = vmatpush3.bf16.msra.mxu0 %v4197_v25 }
 0x428   :  { %3786 = vmatprep.subr.bf16.mxu0 %v4198_v32 }
 0x429   :  { %3817 = vmatpush3.bf16.msra.mxu1 %v4213_v53 }
 0x42a   :  { %3822 = vmatprep.subr.bf16.mxu1 %v4214_v54 }
 0x42b   :  { %3787 = vmatpush3.bf16.msra.mxu0 %v4198_v32 }
 0x42c   :  { %3788 = vmatprep.subr.bf16.mxu0 %v4199_v34 }
 0x42f   :  { %3789 = vmatpush3.bf16.msra.mxu0 %v4199_v34 }
 0x430   :  { %3790 = vmatprep.subr.bf16.mxu0 %v4200_v35 }
 0x433   :  { %3791 = vmatpush3.bf16.msra.mxu0 %v4200_v35 }
 0x434   :  { %3792 = vmatprep.subr.bf16.mxu0 %v4201_v37 }
 0x437   :  { %3793 = vmatpush3.bf16.msra.mxu0 %v4201_v37 }
 0x438   :  { %3794 = vmatprep.subr.bf16.mxu0 %v4202_v38 }
 0x43b   :  { %3795 = vmatpush3.bf16.msra.mxu0 %v4202_v38  ;;  %v4215_v38 = vld [vmem:[#allocation6 + $0x148] sm:$0xff]  }
 0x43c   :  { %3796 = vmatprep.subr.bf16.mxu0 %v4203_v39 }
 0x43f   :  { %3797 = vmatpush3.bf16.msra.mxu0 %v4203_v39  ;;  %v4216_v39 = vld [vmem:[#allocation6 + $0x150] sm:$0xff]  }
 0x440   :  { %3862 = vmatprep.subr.bf16.mxu0 %v4455_v1 }
 0x442   :  { %3799 = vmatmul.mubr.bf16.vlgmr.msra.gmra.mrb[16].mxu0 %v4737_v40 }
 0x443   :  { %3866 = vmatprep.mubr.msk.bf16.mxu0 %vm4456_vm0, %v4455_v1 }
 0x515   :  { %v3800_v57 = vpop.f32.mrb[16].mxu0 }
 0x516   :  { %v1237_v58 = vadd.f32 %v3800_v57, %v1234_v56  ;;  %v1212_v59 = vpop.f32.mrb[17].mxu0 }
 0x517   :  { %v1235_v60 = vadd.f32 %v1234_v56, %v1212_v59  ;;  %v3801_v61 = vpop.f32.mrb[18].mxu0 }
 0x518   :  { %v3267_v62 = vmul.f32 -1.442695, %v1237_v58  ;;  %v1238_v63 = vadd.f32 %v3801_v61, %v1234_v56  ;;  %v1215_v2 = vpop.f32.mrb[19].mxu0 }
 0x519   :  { %v3265_v3 = vmul.f32 -1.442695, %v1235_v60  ;;  %v1236_v4 = vadd.f32 %v1234_v56, %v1215_v2  ;;  %v4223_v2 = vld [vmem:[#allocation6 + $0x188] sm:$0xff]  }
 0x51a   :  { %4315 = vpow2.f32 %v3267_v62  ;;  %v3268_v5 = vmul.f32 -1.442695, %v1238_v63 }
 0x51b   :  { %4317 = vpow2.f32 %v3265_v3  ;;  %v3266_v6 = vmul.f32 -1.442695, %v1236_v4  ;;  %v4224_v3 = vld [vmem:[#allocation6 + $0x190] sm:$0xff]  }
 0x51c   :  { %4319 = vpow2.f32 %v3268_v5  ;;  %v4226_v5 = vld [vmem:[#allocation6 + $0x1a0] sm:$0xff]  }
 0x51d   :  { %4321 = vpow2.f32 %v3266_v6  ;;  %v4227_v6 = vld [vmem:[#allocation6 + $0x1a8] sm:$0xff]  }
 0x524   :  { %v4316_v7 = vpop.eup %4315 }
 0x525   :  { %v4318_v8 = vpop.eup %4317  ;;  %v1253_v9 = vadd.f32 1.0, %v4316_v7  ;;  %v4228_v7 = vld [vmem:[#allocation6 + $0x1b0] sm:$0xff]  }
 0x526   :  { %v4320_v10 = vpop.eup %4319  ;;  %v1251_v11 = vadd.f32 1.0, %v4318_v8  ;;  %v4229_v8 = vld [vmem:[#allocation6 + $0x1b8] sm:$0xff]  }
 0x527   :  { %v4322_v12 = vpop.eup %4321  ;;  %4323 = vrcp.f32 %v1253_v9  ;;  %v1254_v15 = vadd.f32 1.0, %v4320_v10  ;;  %v1409_v9 = vrot.slane %v4746_v55, %v4667_v17 }
 0x528   :  { %4325 = vrcp.f32 %v1251_v11  ;;  %v1252_v18 = vadd.f32 1.0, %v4322_v12 }
 0x529   :  { %4327 = vrcp.f32 %v1254_v15 }
 0x52a   :  { %4329 = vrcp.f32 %v1252_v18 }
 0x531   :  { %v4324_v19 = vpop.eup %4323 }
 0x532   :  { %v4326_v20 = vpop.eup %4325  ;;  %v1265_v23 = vmul.f32 %v4324_v19, %v1237_v58 }
 0x533   :  { %v4328_v21 = vpop.eup %4327  ;;  %v1263_v32 = vmul.f32 %v4326_v20, %v1235_v60 }
 0x534   :  { %v4330_v22 = vpop.eup %4329  ;;  %v1266_v25 = vmul.f32 %v4328_v21, %v1238_v63  ;;  %v4222_v63 = vld [vmem:[#allocation6 + $0x180] sm:$0xff]  }
 0x535   :  { %v1264_v34 = vmul.f32 %v4330_v22, %v1236_v4  ;;  %v4225_v4 = vld [vmem:[#allocation6 + $0x198] sm:$0xff]  }
 0x536   :  { %v1285_v35 = vpack.c.bf16 %v1266_v25, %v1265_v23 }
 0x537   :  { %v1284_v37 = vpack.c.bf16 %v1264_v34, %v1263_v32 }
 0x539   :  { %3818 = vmatprep.mubr.bf16.mxu1 %v1284_v37 }
 0x53a   :  { %3819 = vmatmul.mubr.bf16.vlgmr.msra.gmra.mrb[12].mxu1 %v1285_v35 }
 0x53b   :  { %3823 = vmatpush3.bf16.msra.mxu1 %v4214_v54 }
 0x53c   :  { %3824 = vmatprep.subr.bf16.mxu1 %v4215_v38 }
 0x53f   :  { %3825 = vmatpush3.bf16.msra.mxu1 %v4215_v38 }
 0x540   :  { %3826 = vmatprep.subr.bf16.mxu1 %v4216_v39 }
 0x543   :  { %3827 = vmatpush3.bf16.msra.mxu1 %v4216_v39 }
 0x544   :  { %3828 = vmatprep.subr.bf16.mxu1 %v4217_v41 }
 0x547   :  { %3829 = vmatpush3.bf16.msra.mxu1 %v4217_v41 }
 0x548   :  { %3830 = vmatprep.subr.bf16.mxu1 %v4218_v42 }
 0x54b   :  { %3831 = vmatpush3.bf16.msra.mxu1 %v4218_v42 }
 0x54c   :  { %3832 = vmatprep.subr.bf16.mxu1 %v4219_v44 }
 0x54f   :  { %3833 = vmatpush3.bf16.msra.mxu1 %v4219_v44 }
 0x550   :  { %3834 = vmatprep.subr.bf16.mxu1 %v4220_v46 }
 0x553   :  { %3835 = vmatpush3.bf16.msra.mxu1 %v4220_v46 }
 0x554   :  { %3836 = vmatprep.subr.bf16.mxu1 %v4221_v48 }
 0x557   :  { %3837 = vmatpush3.bf16.msra.mxu1 %v4221_v48 }
 0x558   :  { %3842 = vmatprep.subr.bf16.mxu1 %v4222_v63 }
 0x60d   :  { %v3820_v51 = vpop.f32.mrb[12].mxu1 }
 0x60e   :  { %v1372_v53 = vpop.f32.mrb[13].mxu1  ;;  %v1381_v56 = vadd.f32 %v3820_v51, %v1289_v50 }
 0x60f   :  { %v3821_v54 = vpop.f32.mrb[14].mxu1  ;;  %v1373_v59 = vadd.f32 %v1372_v53, %v1289_v50 }
 0x610   :  { %v1384_v57 = vadd.f32 %v3821_v54, %v1289_v50  ;;  %v1375_v58 = vpop.f32.mrb[15].mxu1 }
 0x611   :  { %v1376_v60 = vadd.f32 %v1375_v58, %v1289_v50 }
 0x612   :  { %v4752_v61 = vpack.c.bf16 %v1384_v57, %v1381_v56 }
 0x613   :  { %v4754_v62 = vpack.c.bf16 %v1376_v60, %v1373_v59  ;;  %v4768_v60 = vld [vmem:[%s4901_s8] sm:$0xff]  }
 0x615   :  { %3838 = vmatprep.mubr.bf16.mxu1 %v4754_v62 }
 0x616   :  { %3839 = vmatmul.mubr.bf16.vlgmr.msra.gmra.mrb[16].mxu1 %v4752_v61 }
 0x617   :  { %3843 = vmatpush3.bf16.msra.mxu1 %v4222_v63  ;;  %v4232_v63 = vld [vmem:[#allocation6 + $0x208] sm:$0xff]  }
 0x618   :  { %3844 = vmatprep.subr.bf16.mxu1 %v4223_v2 }
 0x61b   :  { %3845 = vmatpush3.bf16.msra.mxu1 %v4223_v2  ;;  %v4234_v2 = vld [vmem:[#allocation6 + $0x210] sm:$0xff]  }
 0x61c   :  { %3846 = vmatprep.subr.bf16.mxu1 %v4224_v3 }
 0x61f   :  { %3847 = vmatpush3.bf16.msra.mxu1 %v4224_v3  ;;  %v4238_v3 = vld [vmem:[#allocation6 + $0x220] sm:$0xff]  }
 0x620   :  { %3848 = vmatprep.subr.bf16.mxu1 %v4225_v4 }
 0x623   :  { %3849 = vmatpush3.bf16.msra.mxu1 %v4225_v4  ;;  %v4240_v4 = vld [vmem:[#allocation6 + $0x228] sm:$0xff]  }
 0x624   :  { %3850 = vmatprep.subr.bf16.mxu1 %v4226_v5 }
 0x627   :  { %3851 = vmatpush3.bf16.msra.mxu1 %v4226_v5  ;;  %v4242_v5 = vld [vmem:[#allocation6 + $0x230] sm:$0xff]  }
 0x628   :  { %3852 = vmatprep.subr.bf16.mxu1 %v4227_v6 }
 0x62b   :  { %3853 = vmatpush3.bf16.msra.mxu1 %v4227_v6  ;;  %v4244_v6 = vld [vmem:[#allocation6 + $0x238] sm:$0xff]  }
 0x62c   :  { %3854 = vmatprep.subr.bf16.mxu1 %v4228_v7 }
 0x62f   :  { %3855 = vmatpush3.bf16.msra.mxu1 %v4228_v7  ;;  %v1556_v7 = vsub.s32 3, %v4593_v27 }
 0x630   :  { %3856 = vmatprep.subr.bf16.mxu1 %v4229_v8 }
 0x633   :  { %3857 = vmatpush3.bf16.msra.mxu1 %v4229_v8  ;;  %v1557_v8 = vrot.slane %v4746_v55, %v1556_v7 }
 0x634   :  { %3870 = vmatprep.subr.bf16.mxu1 %v4455_v1 }
 0x6e9   :  { %v3840_v10 = vpop.f32.mrb[16].mxu1 }
 0x6ea   :  { %v1501_v11 = vadd.f32 %v3840_v10, %v1409_v9  ;;  %v1492_v12 = vpop.f32.mrb[17].mxu1 }
 0x6eb   :  { %v1493_v15 = vadd.f32 %v1492_v12, %v1409_v9  ;;  %v3841_v18 = vpop.f32.mrb[18].mxu1 }
 0x6ec   :  { %v3287_v19 = vmul.f32 -1.442695, %v1501_v11  ;;  %v1504_v20 = vadd.f32 %v3841_v18, %v1409_v9  ;;  %v1495_v21 = vpop.f32.mrb[19].mxu1 }
 0x6ed   :  { %v3285_v22 = vmul.f32 -1.442695, %v1493_v15  ;;  %v1496_v23 = vadd.f32 %v1495_v21, %v1409_v9 }
 0x6ee   :  { %4331 = vpow2.f32 %v3287_v19  ;;  %v3288_v25 = vmul.f32 -1.442695, %v1504_v20 }
 0x6ef   :  { %4333 = vpow2.f32 %v3285_v22  ;;  %v3286_v32 = vmul.f32 -1.442695, %v1496_v23 }
 0x6f0   :  { %4335 = vpow2.f32 %v3288_v25 }
 0x6f1   :  { %4337 = vpow2.f32 %v3286_v32 }
 0x6f8   :  { %v4332_v34 = vpop.eup %4331 }
 0x6f9   :  { %v4334_v35 = vpop.eup %4333  ;;  %v1521_v37 = vadd.f32 1.0, %v4332_v34 }
 0x6fa   :  { %v4336_v38 = vpop.eup %4335  ;;  %v1519_v39 = vadd.f32 1.0, %v4334_v35 }
 0x6fb   :  { %v4338_v41 = vpop.eup %4337  ;;  %4339 = vrcp.f32 %v1521_v37  ;;  %v1522_v42 = vadd.f32 1.0, %v4336_v38 }
 0x6fc   :  { %4341 = vrcp.f32 %v1519_v39  ;;  %v1520_v44 = vadd.f32 1.0, %v4338_v41 }
 0x6fd   :  { %4343 = vrcp.f32 %v1522_v42  ;;  %v4241_v42 = vld [vmem:[#allocation6 + $0x1e0] sm:$0xff]  }
 0x6fe   :  { %4345 = vrcp.f32 %v1520_v44  ;;  %v4243_v44 = vld [vmem:[#allocation6 + $0x1e8] sm:$0xff]  }
 0x705   :  { %v4340_v46 = vpop.eup %4339 }
 0x706   :  { %v4342_v48 = vpop.eup %4341  ;;  %v1533_v53 = vmul.f32 %v4340_v46, %v1501_v11  ;;  %v4245_v46 = vld [vmem:[#allocation6 + $0x1f0] sm:$0xff]  }
 0x707   :  { %v4344_v50 = vpop.eup %4343  ;;  %v1531_v56 = vmul.f32 %v4342_v48, %v1493_v15  ;;  %v4246_v48 = vld [vmem:[#allocation6 + $0x1f8] sm:$0xff]  }
 0x708   :  { %v4346_v51 = vpop.eup %4345  ;;  %v1534_v54 = vmul.f32 %v4344_v50, %v1504_v20  ;;  %v4247_v50 = vld [vmem:[#allocation6 + $0x240] sm:$0xff]  }
 0x709   :  { %v1532_v57 = vmul.f32 %v4346_v51, %v1496_v23  ;;  %v4248_v51 = vld [vmem:[#allocation6 + $0x248] sm:$0xff]  }
 0x70a   :  { %v1553_v58 = vpack.c.bf16 %v1534_v54, %v1533_v53  ;;  %v4249_v53 = vld [vmem:[#allocation6 + $0x250] sm:$0xff]   ;;  %v4250_v54 = vld [vmem:[#allocation6 + $0x258] sm:$0xff]  }
 0x70b   :  { %v1552_v59 = vpack.c.bf16 %v1532_v57, %v1531_v56  ;;  %v4253_v56 = vld [vmem:[#allocation6 + $0x270] sm:$0xff]   ;;  %v4254_v57 = vld [vmem:[#allocation6 + $0x278] sm:$0xff]  }
 0x70d   :  { %3858 = vmatprep.mubr.bf16.mxu1 %v1552_v59 }
 0x70e   :  { %3859 = vmatmul.mubr.bf16.vlgmr.msra.gmra.mrb[20].mxu1 %v1553_v58 }
 0x70f   :  { %3871 = vmatpush3.bf16.msra.mxu1 %v4754_v62  ;;  %3874 = vmatprep.mubr.msk.bf16.mxu1 %vm4456_vm0, %v4455_v1  ;;  %v4231_v62 = vld [vmem:[#allocation6 + $0x200] sm:$0xff]  }
 0x710   :  { %3872 = vmatprep.subr.bf16.mxu1 %v4455_v1 }
 0x713   :  { %3873 = vmatpush3.bf16.msra.mxu1 %v4752_v61  ;;  %v4236_v61 = vld [vmem:[#allocation6 + $0x218] sm:$0xff]  }
 0x714   :  { %3878 = vmatprep.subr.bf16.mxu1 %v4455_v1 }
 0x716   :  { %3875 = vmatmul.mubr.msk.bf16.vlgmr.msra.gmra.mrb[24].mxu1 %vm1666_vm2, %v4768_v60 }
 0x717   :  { %3894 = vmatprep.mubr.msk.bf16.mxu1 %vm4456_vm0, %v4455_v1  ;;  %3879 = vmatpush3.bf16.msra.mxu1 %v4231_v62 }
 0x718   :  { %3880 = vmatprep.subr.bf16.mxu1 %v4455_v1 }
 0x71b   :  { %3881 = vmatpush3.bf16.msra.mxu1 %v4232_v63 }
 0x71c   :  { %3882 = vmatprep.subr.bf16.mxu1 %v4455_v1 }
 0x71f   :  { %3883 = vmatpush3.bf16.msra.mxu1 %v4234_v2 }
 0x720   :  { %3884 = vmatprep.subr.bf16.mxu1 %v4455_v1 }
 0x723   :  { %3885 = vmatpush3.bf16.msra.mxu1 %v4236_v61 }
 0x724   :  { %3886 = vmatprep.subr.bf16.mxu1 %v4455_v1 }
 0x727   :  { %3887 = vmatpush3.bf16.msra.mxu1 %v4238_v3 }
 0x728   :  { %3888 = vmatprep.subr.bf16.mxu1 %v4455_v1 }
 0x72b   :  { %3889 = vmatpush3.bf16.msra.mxu1 %v4240_v4 }
 0x72c   :  { %3890 = vmatprep.subr.bf16.mxu1 %v4455_v1 }
 0x72f   :  { %3891 = vmatpush3.bf16.msra.mxu1 %v4242_v5  ;;  %v1971_v5 = vsub.s32 4, %v4593_v27 }
 0x730   :  { %3892 = vmatprep.subr.bf16.mxu1 %v4455_v1 }
 0x733   :  { %3893 = vmatpush3.bf16.msra.mxu1 %v4244_v6  ;;  %v1972_v6 = vrot.slane %v4746_v55, %v1971_v5 }
 0x734   :  { %3918 = vmatprep.subr.bf16.mxu1 %v4455_v1 }
 0x7e1   :  { %v3860_v9 = vpop.f32.mrb[20].mxu1 }
 0x7e2   :  { %v1649_v10 = vadd.f32 %v3860_v9, %v1557_v8  ;;  %v1640_v11 = vpop.f32.mrb[21].mxu1 }
 0x7e3   :  { %v1641_v12 = vadd.f32 %v1640_v11, %v1557_v8  ;;  %v3861_v15 = vpop.f32.mrb[22].mxu1 }
 0x7e4   :  { %v1657_v18 = vmul.f32 %v4703_v43, %v1649_v10  ;;  %v1652_v19 = vadd.f32 %v3861_v15, %v1557_v8  ;;  %v1643_v20 = vpop.f32.mrb[23].mxu1  ;;  %v4233_v43 = vld [vmem:[#allocation6 + $0x1c0] sm:$0xff]  }
 0x7e5   :  { %v1655_v21 = vmul.f32 %v1641_v12, %v4709_v45  ;;  %v1644_v22 = vadd.f32 %v1643_v20, %v1557_v8  ;;  %v4235_v45 = vld [vmem:[#allocation6 + $0x1c8] sm:$0xff]  }
 0x7e6   :  { %v1658_v23 = vmul.f32 %v4713_v47, %v1652_v19  ;;  %v4237_v47 = vld [vmem:[#allocation6 + $0x1d0] sm:$0xff]  }
 0x7e7   :  { %v1656_v25 = vmul.f32 %v1644_v22, %v4719_v49  ;;  %v4239_v49 = vld [vmem:[#allocation6 + $0x1d8] sm:$0xff]  }
 0x7e8   :  { %v1660_v32 = vpack.c.bf16 %v1658_v23, %v1657_v18 }
 0x7e9   :  { %v1659_v34 = vpack.c.bf16 %v1656_v25, %v1655_v21  ;;  %v1749_v35 = vpop.f32.mrb[24].mxu1 }
 0x7ea   :  { %v3876_v37 = vpop.f32.mrb[25].mxu1 }
 0x7eb   :  { %3863 = vmatpush3.bf16.msra.mxu0 %v1659_v34  ;;  %v1752_v38 = vpop.f32.mrb[26].mxu1 }
 0x7ec   :  { %3864 = vmatprep.subr.bf16.mxu0 %v4455_v1  ;;  %v1790_v39 = vpack.c.bf16 %v1752_v38, %v1749_v35  ;;  %v3877_v41 = vpop.f32.mrb[27].mxu1 }
 0x7ed   :  { %v4255_v41 = vld [vmem:[#allocation6 + $0x2c0] sm:$0xff]  }
 0x7ee   :  { %3895 = vmatmul.mubr.bf16.vlgmr.msra.gmra.mrb[28].mxu1 %v1790_v39 }
 0x7ef   :  { %3865 = vmatpush3.bf16.msra.mxu0 %v1660_v32  ;;  %3934 = vmatprep.mubr.msk.bf16.mxu1 %vm4456_vm0, %v4455_v1 }
 0x7f0   :  { %3898 = vmatprep.subr.bf16.mxu0 %v4455_v1  ;;  %3919 = vmatpush3.bf16.msra.mxu1 %v4247_v50 }
 0x7f1   :  { %3920 = vmatprep.subr.bf16.mxu1 %v4455_v1 }
 0x7f2   :  { %3867 = vmatmul.mubr.msk.bf16.vlgmr.msra.gmra.mrb[20].mxu0 %vm1666_vm2, %v4768_v60 }
 0x7f3   :  { %3899 = vmatpush3.bf16.msra.mxu0 %v4233_v43  ;;  %3914 = vmatprep.mubr.msk.bf16.mxu0 %vm4456_vm0, %v4455_v1  ;;  %v4256_v43 = vld [vmem:[#allocation6 + $0x2c8] sm:$0xff]  }
 0x7f4   :  { %3900 = vmatprep.subr.bf16.mxu0 %v4455_v1  ;;  %3921 = vmatpush3.bf16.msra.mxu1 %v4248_v51 }
 0x7f5   :  { %3922 = vmatprep.subr.bf16.mxu1 %v4455_v1 }
 0x7f7   :  { %3901 = vmatpush3.bf16.msra.mxu0 %v4235_v45  ;;  %v4257_v45 = vld [vmem:[#allocation6 + $0x2d0] sm:$0xff]  }
 0x7f8   :  { %3902 = vmatprep.subr.bf16.mxu0 %v4455_v1  ;;  %3923 = vmatpush3.bf16.msra.mxu1 %v4249_v53 }
 0x7f9   :  { %3924 = vmatprep.subr.bf16.mxu1 %v4455_v1 }
 0x7fb   :  { %3903 = vmatpush3.bf16.msra.mxu0 %v4237_v47  ;;  %v4258_v47 = vld [vmem:[#allocation6 + $0x2d8] sm:$0xff]  }
 0x7fc   :  { %3904 = vmatprep.subr.bf16.mxu0 %v4455_v1  ;;  %3925 = vmatpush3.bf16.msra.mxu1 %v4250_v54 }
 0x7fd   :  { %3926 = vmatprep.subr.bf16.mxu1 %v4455_v1 }
 0x7ff   :  { %3905 = vmatpush3.bf16.msra.mxu0 %v4239_v49  ;;  %v4259_v49 = vld [vmem:[#allocation6 + $0x2e0] sm:$0xff]  }
 0x800   :  { %3906 = vmatprep.subr.bf16.mxu0 %v4455_v1 }
 0x803   :  { %3907 = vmatpush3.bf16.msra.mxu0 %v4241_v42  ;;  %v2100_v42 = vsub.s32 5, %v4593_v27 }
 0x804   :  { %3908 = vmatprep.subr.bf16.mxu0 %v4455_v1 }
 0x805   :  { %v2101_v51 = vrot.slane %v4746_v55, %v2100_v42  ;;  %v4276_v42 = vld [vmem:[#allocation6 + $0x328] sm:$0xff]  }
 0x807   :  { %3909 = vmatpush3.bf16.msra.mxu0 %v4243_v44 }
 0x808   :  { %3910 = vmatprep.subr.bf16.mxu0 %v4455_v1 }
 0x80b   :  { %3911 = vmatpush3.bf16.msra.mxu0 %v4245_v46 }
 0x80c   :  { %3912 = vmatprep.subr.bf16.mxu0 %v4455_v1 }
 0x80f   :  { %3913 = vmatpush3.bf16.msra.mxu0 %v4246_v48 }
 0x812   :  { %3915 = vmatmul.mubr.bf16.vlgmr.msra.gmra.mrb[24].mxu0 %v4678_v31  ;;  %v4251_v31 = vld [vmem:[#allocation6 + $0x260] sm:$0xff]  }
 0x813   :  { %3940 = vmatprep.mubr.msk.bf16.mxu0 %vm602_vm1, %v4625_v0  ;;  %3927 = vmatpush3.bf16.msra.mxu1 %v4251_v31  ;;  %v4252_v0 = vld [vmem:[#allocation6 + $0x268] sm:$0xff]  }
 0x814   :  { %3928 = vmatprep.subr.bf16.mxu1 %v4455_v1 }
 0x817   :  { %3929 = vmatpush3.bf16.msra.mxu1 %v4252_v0 }
 0x818   :  { %3930 = vmatprep.subr.bf16.mxu1 %v4455_v1 }
 0x81b   :  { %3931 = vmatpush3.bf16.msra.mxu1 %v4253_v56 }
 0x81c   :  { %3932 = vmatprep.subr.bf16.mxu1 %v4455_v1 }
 0x81f   :  { %3933 = vmatpush3.bf16.msra.mxu1 %v4254_v57 }
 0x820   :  { %3954 = vmatprep.subr.bf16.mxu1 %v4255_v41 }
 0x8c1   :  { %v1873_v58 = vpop.f32.mrb[28].mxu1 }
 0x8c2   :  { %v3896_v59 = vpop.f32.mrb[29].mxu1 }
 0x8c3   :  { %v1876_v62 = vpop.f32.mrb[30].mxu1 }
 0x8c4   :  { %v3897_v63 = vpop.f32.mrb[31].mxu1 }
 0x8c5   :  { %v1704_v2 = vpop.f32.mrb[20].mxu0 }
 0x8c6   :  { %v3868_v61 = vpop.f32.mrb[21].mxu0  ;;  %v1711_v46 = vmul.f32 0.03125, %v1704_v2 }
 0x8c7   :  { %v1707_v3 = vpop.f32.mrb[22].mxu0 }
 0x8c8   :  { %v3869_v4 = vpop.f32.mrb[23].mxu0  ;;  %v1712_v48 = vmul.f32 0.03125, %v1707_v3  ;;  %v4824_v56 = vadd.f32 %v1711_v46, %v4645_v13  ;;  %v4387_v13 = vld [vmem:[%s4900_s7] sm:$0xff]   ;;  %v4278_v46 = vld [vmem:[#allocation6 + $0x338] sm:$0xff]  }
 0x8ca   :  { %v4827_v57 = vadd.f32 %v1712_v48, %v4647_v14  ;;  %v4260_v14 = vld [vmem:[#allocation6 + $0x2e8] sm:$0xff]   ;;  %v4279_v48 = vld [vmem:[#allocation6 + $0x340] sm:$0xff]  }
 0x8e5   :  { %v1962_v8 = vpop.f32.mrb[24].mxu0 }
 0x8e6   :  { %v1963_v9 = vadd.f32 %v1962_v8, %v1873_v58  ;;  %v3916_v10 = vpop.f32.mrb[25].mxu0 }
 0x8e7   :  { %v1965_v11 = vpop.f32.mrb[26].mxu0  ;;  %v4264_v10 = vld [vmem:[#allocation6 + $0x288] sm:$0xff]  }
 0x8e8   :  { %v1973_v12 = vadd.f32 %v1972_v6, %v1963_v9  ;;  %v1966_v15 = vadd.f32 %v1965_v11, %v1876_v62  ;;  %v3917_v18 = vpop.f32.mrb[27].mxu0 }
 0x8ea   :  { %v3316_v19 = vmul.f32 -1.442695, %v1973_v12  ;;  %v1974_v20 = vadd.f32 %v1972_v6, %v1966_v15 }
 0x8ec   :  { %4347 = vpow2.f32 %v3316_v19  ;;  %v3317_v21 = vmul.f32 -1.442695, %v1974_v20 }
 0x8ee   :  { %4349 = vpow2.f32 %v3317_v21 }
 0x8f6   :  { %v4348_v22 = vpop.eup %4347 }
 0x8f7   :  { %v1981_v23 = vadd.f32 1.0, %v4348_v22 }
 0x8f8   :  { %v4350_v25 = vpop.eup %4349 }
 0x8f9   :  { %4351 = vrcp.f32 %v1981_v23  ;;  %v1982_v32 = vadd.f32 1.0, %v4350_v25  ;;  %v4266_v25 = vld [vmem:[#allocation6 + $0x298] sm:$0xff]  }
 0x8fb   :  { %4353 = vrcp.f32 %v1982_v32 }
 0x903   :  { %v4352_v34 = vpop.eup %4351 }
 0x904   :  { %v1987_v37 = vmul.f32 %v4352_v34, %v1973_v12  ;;  %v4265_v12 = vld [vmem:[#allocation6 + $0x290] sm:$0xff]  }
 0x905   :  { %v4354_v35 = vpop.eup %4353 }
 0x906   :  { %v1988_v38 = vmul.f32 %v4354_v35, %v1974_v20  ;;  %v4267_v35 = vld [vmem:[#allocation6 + $0x2a0] sm:$0xff]  }
 0x908   :  { %v2006_v39 = vpack.c.bf16 %v1988_v38, %v1987_v37  ;;  %v4268_v37 = vld [vmem:[#allocation6 + $0x2a8] sm:$0xff]   ;;  %v4269_v38 = vld [vmem:[#allocation6 + $0x2b0] sm:$0xff]  }
 0x90a   :  { %3935 = vmatmul.mubr.bf16.vlgmr.msra.gmra.mrb[32].mxu1 %v2006_v39  ;;  %v4270_v39 = vld [vmem:[#allocation6 + $0x2b8] sm:$0xff]  }
 0x90b   :  { %3955 = vmatpush3.bf16.msra.mxu1 %v4255_v41  ;;  %v4271_v41 = vld [vmem:[#allocation6 + $0x300] sm:$0xff]  }
 0x90c   :  { %3956 = vmatprep.subr.bf16.mxu1 %v4256_v43 }
 0x90f   :  { %3957 = vmatpush3.bf16.msra.mxu1 %v4256_v43  ;;  %v4272_v43 = vld [vmem:[#allocation6 + $0x308] sm:$0xff]  }
 0x910   :  { %3958 = vmatprep.subr.bf16.mxu1 %v4257_v45 }
 0x913   :  { %3959 = vmatpush3.bf16.msra.mxu1 %v4257_v45  ;;  %v4273_v45 = vld [vmem:[#allocation6 + $0x310] sm:$0xff]  }
 0x914   :  { %3960 = vmatprep.subr.bf16.mxu1 %v4258_v47 }
 0x917   :  { %3961 = vmatpush3.bf16.msra.mxu1 %v4258_v47  ;;  %v4274_v47 = vld [vmem:[#allocation6 + $0x318] sm:$0xff]  }
 0x918   :  { %3962 = vmatprep.subr.bf16.mxu1 %v4259_v49 }
 0x91b   :  { %3963 = vmatpush3.bf16.msra.mxu1 %v4259_v49  ;;  %v4275_v49 = vld [vmem:[#allocation6 + $0x320] sm:$0xff]  }
 0x91c   :  { %3964 = vmatprep.subr.bf16.mxu1 %v4260_v14 }
 0x91f   :  { %3965 = vmatpush3.bf16.msra.mxu1 %v4260_v14  ;;  %v4292_v14 = vld [vmem:[#allocation6 + $0x3a8] sm:$0xff]  }
 0x9dd   :  { %v2089_v44 = vpop.f32.mrb[32].mxu1 }
 0x9de   :  { %v2096_v50 = vadd.f32 %v2089_v44, %v4672_v26  ;;  %v3936_v53 = vpop.f32.mrb[33].mxu1  ;;  %v2172_v26 = vpack.c.bf16 %v4827_v57, %v4824_v56  ;;  %v4277_v44 = vld [vmem:[#allocation6 + $0x330] sm:$0xff]  }
 0x9df   :  { %v2092_v54 = vpop.f32.mrb[34].mxu1  ;;  %v4282_v53 = vld [vmem:[#allocation6 + $0x358] sm:$0xff]  }
 0x9e0   :  { %v2097_v31 = vadd.f32 %v2092_v54, %v4674_v30  ;;  %v3937_v0 = vpop.f32.mrb[35].mxu1  ;;  %v2102_v58 = vadd.f32 %v2101_v51, %v2096_v50  ;;  %v4261_v30 = vld [vmem:[#allocation6 + $0x2f0] sm:$0xff]   ;;  %v4280_v50 = vld [vmem:[#allocation6 + $0x348] sm:$0xff]   ;;  %v4283_v54 = vld [vmem:[#allocation6 + $0x360] sm:$0xff]  }
 0x9e1   :  { %3966 = vmatprep.subr.bf16.mxu1 %v4261_v30  ;;  %v4285_v0 = vld [vmem:[#allocation6 + $0x370] sm:$0xff]  }
 0x9e2   :  { %v2103_v59 = vadd.f32 %v2101_v51, %v2097_v31  ;;  %3967 = vmatpush3.bf16.msra.mxu1 %v4261_v30  ;;  %v4281_v51 = vld [vmem:[#allocation6 + $0x350] sm:$0xff]   ;;  %v4284_v31 = vld [vmem:[#allocation6 + $0x368] sm:$0xff]  }
 0x9e3   :  { %v4293_v30 = vld [vmem:[#allocation6 + $0x3b0] sm:$0xff]  }
 0x9e4   :  { %v2106_v62 = vpack.c.bf16 %v2103_v59, %v2102_v58  ;;  %v4286_v58 = vld [vmem:[#allocation6 + $0x378] sm:$0xff]   ;;  %v4288_v59 = vld [vmem:[#allocation6 + $0x388] sm:$0xff]  }
 0x9e6   :  { %3938 = vmatprep.subr.bf16.mxu0 %v2106_v62 }
 0x9e7   :  { %3939 = vmatpush3.bf16.msra.mxu0 %v2106_v62  ;;  %v4289_v62 = vld [vmem:[#allocation6 + $0x390] sm:$0xff]  }
 0x9e8   :  { %3948 = vmatprep.subr.bf16.mxu0 %v2172_v26 }
 0x9ea   :  { %3941 = vmatmul.mubr.msk.bf16.vlgmr.msra.gmra.mrb[28].mxu0 %vm602_vm1, %v4684_v29  ;;  %v4262_v29 = vld [vmem:[#allocation6 + $0x2f8] sm:$0xff]  }
 0x9eb   :  { %3949 = vmatpush3.bf16.msra.mxu0 %v2172_v26  ;;  %3944 = vmatprep.mubr.msk.bf16.mxu0 %vm602_vm1, %v4690_v33  ;;  %v4263_v33 = vld [vmem:[#allocation6 + $0x280] sm:$0xff]   ;;  %v4290_v26 = vld [vmem:[#allocation6 + $0x398] sm:$0xff]  }
 0x9ec   :  { %3968 = vmatprep.subr.bf16.mxu1 %v4262_v29 }
 0x9ed   :  { %3969 = vmatpush3.bf16.msra.mxu1 %v4262_v29  ;;  %v4295_v29 = vld [vmem:[#allocation6 + $0x3c0] sm:$0xff]  }
 0x9ee   :  { %3974 = vmatprep.subr.bf16.mxu1 %v4263_v33 }
 0x9f2   :  { %3945 = vmatmul.mubr.msk.bf16.gmra.mrb[32].mxu0 %vm602_vm1, %v4699_v36 }
 0x9f3   :  { %3950 = vmatprep.mubr.msk.bf16.mxu0 %vm602_vm1, %v4387_v13  ;;  %v4291_v13 = vld [vmem:[#allocation6 + $0x3a0] sm:$0xff]  }
 0x9fa   :  { %3951 = vmatmul.mubr.msk.bf16.vlgmr.msra.gmra.mrb[36].mxu0 %vm602_vm1, %v4662_v16 }
 0xabd   :  { %v3942_v36 = vpop.f32.mrb[28].mxu0 }
 0xabe   :  { %v2141_v55 = vpop.f32.mrb[29].mxu0 }
 0xabf   :  { %v3943_v63 = vpop.f32.mrb[30].mxu0 }
 0xac0   :  { %v2240_v2 = vpack.c.bf16 %v3943_v63, %v3942_v36  ;;  %v2144_v61 = vpop.f32.mrb[31].mxu0 }
 0xac1   :  { %v2239_v3 = vpack.c.bf16 %v2144_v61, %v2141_v55 }
 0xac5   :  { %v3946_v4 = vpop.f32.mrb[32].mxu0 }
 0xac6   :  { %v2157_v5 = vpop.f32.mrb[33].mxu0 }
 0xac7   :  { %v3947_v16 = vpop.f32.mrb[34].mxu0 }
 0xac8   :  { %v2259_v6 = vpack.c.bf16 %v3947_v16, %v3946_v4  ;;  %v2160_v8 = vpop.f32.mrb[35].mxu0 }
 0xac9   :  { %v2258_v9 = vpack.c.bf16 %v2160_v8, %v2157_v5 }
 0xacb   :  { %3970 = vmatprep.mubr.bf16.mxu1 %v2258_v9 }
 0xacc   :  { %3971 = vmatmul.mubr.bf16.vlgmr.msra.gmra.mrb[36].mxu1 %v2259_v6 }
 0xacd   :  { %3975 = vmatpush3.bf16.msra.mxu1 %v4263_v33  ;;  %3990 = vmatprep.mubr.bf16.mxu1 %v2239_v3  ;;  %v4843_v11 = vpop.f32.mrb[36].mxu0  ;;  %v4864_v33 = vld [vmem:[%s4905_s12 + $0x8] sm:$0xff] }
 0xace   :  { %3976 = vmatprep.subr.bf16.mxu1 %v4264_v10  ;;  %v2456_v15 = vmul.f32 %v4843_v11, %v4843_v11  ;;  %v4847_v18 = vpop.f32.mrb[37].mxu0  ;;  %v2699_v36 = vrot.slane %v4864_v33, %v4596_v28 }
 0xacf   :  { %v2454_v19 = vmul.f32 %v4847_v18, %v4847_v18  ;;  %v4851_v20 = vpop.f32.mrb[38].mxu0 }
 0xad0   :  { %v2457_v21 = vmul.f32 %v4851_v20, %v4851_v20  ;;  %v4855_v22 = vpop.f32.mrb[39].mxu0 }
 0xad1   :  { %3977 = vmatpush3.bf16.msra.mxu1 %v4264_v10  ;;  %v2455_v23 = vmul.f32 %v4855_v22, %v4855_v22 }
 0xad2   :  { %3978 = vmatprep.subr.bf16.mxu1 %v4265_v12  ;;  %v2476_v32 = vpack.c.bf16 %v2457_v21, %v2456_v15 }
 0xad3   :  { %v2475_v34 = vpack.c.bf16 %v2455_v23, %v2454_v19 }
 0xad5   :  { %3979 = vmatpush3.bf16.msra.mxu1 %v4265_v12 }
 0xad6   :  { %3980 = vmatprep.subr.bf16.mxu1 %v4266_v25 }
 0xad9   :  { %3981 = vmatpush3.bf16.msra.mxu1 %v4266_v25 }
 0xada   :  { %3982 = vmatprep.subr.bf16.mxu1 %v4267_v35 }
 0xadd   :  { %3983 = vmatpush3.bf16.msra.mxu1 %v4267_v35 }
 0xade   :  { %3984 = vmatprep.subr.bf16.mxu1 %v4268_v37 }
 0xae1   :  { %3985 = vmatpush3.bf16.msra.mxu1 %v4268_v37 }
 0xae2   :  { %3986 = vmatprep.subr.bf16.mxu1 %v4269_v38 }
 0xae5   :  { %3987 = vmatpush3.bf16.msra.mxu1 %v4269_v38 }
 0xae6   :  { %3988 = vmatprep.subr.bf16.mxu1 %v4270_v39 }
 0xae9   :  { %3989 = vmatpush3.bf16.msra.mxu1 %v4270_v39 }
 0xaea   :  { %3994 = vmatprep.subr.bf16.mxu1 %v4271_v41 }
 0xaec   :  { %3991 = vmatmul.mubr.bf16.vlgmr.msra.gmra.mrb[36].mxu1 %v2240_v2 }
 0xaed   :  { %3995 = vmatpush3.bf16.msra.mxu1 %v4271_v41  ;;  %4010 = vmatprep.mubr.bf16.mxu1 %v2475_v34 }
 0xaee   :  { %3996 = vmatprep.subr.bf16.mxu1 %v4272_v43 }
 0xaf1   :  { %3997 = vmatpush3.bf16.msra.mxu1 %v4272_v43 }
 0xaf2   :  { %3998 = vmatprep.subr.bf16.mxu1 %v4273_v45 }
 0xaf5   :  { %3999 = vmatpush3.bf16.msra.mxu1 %v4273_v45 }
 0xaf6   :  { %4000 = vmatprep.subr.bf16.mxu1 %v4274_v47 }
 0xaf9   :  { %4001 = vmatpush3.bf16.msra.mxu1 %v4274_v47 }
 0xafa   :  { %4002 = vmatprep.subr.bf16.mxu1 %v4275_v49 }
 0xafd   :  { %4003 = vmatpush3.bf16.msra.mxu1 %v4275_v49 }
 0xafe   :  { %4004 = vmatprep.subr.bf16.mxu1 %v4276_v42 }
 0xb01   :  { %4005 = vmatpush3.bf16.msra.mxu1 %v4276_v42  ;;  %v4296_v42 = vld [vmem:[#allocation6 + $0x3c8] sm:$0xff]  }
 0xb02   :  { %4006 = vmatprep.subr.bf16.mxu1 %v4277_v44 }
 0xb05   :  { %4007 = vmatpush3.bf16.msra.mxu1 %v4277_v44  ;;  %v4297_v44 = vld [vmem:[#allocation6 + $0x3d0] sm:$0xff]  }
 0xb06   :  { %4008 = vmatprep.subr.bf16.mxu1 %v4278_v46 }
 0xb09   :  { %4009 = vmatpush3.bf16.msra.mxu1 %v4278_v46  ;;  %v4298_v46 = vld [vmem:[#allocation6 + $0x3d8] sm:$0xff]  }
 0xb0a   :  { %4014 = vmatprep.subr.bf16.mxu1 %v4279_v48 }
 0xb0c   :  { %4011 = vmatmul.mubr.bf16.vlgmr.msra.gmra.mrb[36].mxu1 %v2476_v32 }
 0xb0d   :  { %4015 = vmatpush3.bf16.msra.mxu1 %v4279_v48  ;;  %4030 = vmatprep.mubr.bf16.mxu1 %v4728_v24  ;;  %v4287_v24 = vld [vmem:[#allocation6 + $0x380] sm:$0xff]  }
 0xb0e   :  { %4016 = vmatprep.subr.bf16.mxu1 %v4280_v50  ;;  %4034 = vmatprep.subr.bf16.mxu0 %v4287_v24  ;;  %v4299_v48 = vld [vmem:[#allocation6 + $0x3e0] sm:$0xff]  }
 0xb0f   :  { %4035 = vmatpush3.bf16.msra.mxu0 %v4287_v24 }
 0xb10   :  { %4036 = vmatprep.subr.bf16.mxu0 %v4288_v59 }
 0xb11   :  { %4017 = vmatpush3.bf16.msra.mxu1 %v4280_v50  ;;  %v4300_v50 = vld [vmem:[#allocation6 + $0x3e8] sm:$0xff]  }
 0xb12   :  { %4018 = vmatprep.subr.bf16.mxu1 %v4281_v51 }
 0xb13   :  { %4037 = vmatpush3.bf16.msra.mxu0 %v4288_v59 }
 0xb14   :  { %4038 = vmatprep.subr.bf16.mxu0 %v4289_v62 }
 0xb15   :  { %4019 = vmatpush3.bf16.msra.mxu1 %v4281_v51  ;;  %v4301_v51 = vld [vmem:[#allocation6 + $0x3f0] sm:$0xff]  }
 0xb16   :  { %4020 = vmatprep.subr.bf16.mxu1 %v4282_v53 }
 0xb17   :  { %4039 = vmatpush3.bf16.msra.mxu0 %v4289_v62 }
 0xb18   :  { %4040 = vmatprep.subr.bf16.mxu0 %v4290_v26 }
 0xb19   :  { %4021 = vmatpush3.bf16.msra.mxu1 %v4282_v53  ;;  %v4302_v53 = vld [vmem:[#allocation6 + $0x3f8] sm:$0xff]  }
 0xb1a   :  { %4022 = vmatprep.subr.bf16.mxu1 %v4283_v54 }
 0xb1b   :  { %4041 = vmatpush3.bf16.msra.mxu0 %v4290_v26 }
 0xb1c   :  { %4042 = vmatprep.subr.bf16.mxu0 %v4291_v13 }
 0xb1d   :  { %4023 = vmatpush3.bf16.msra.mxu1 %v4283_v54  ;;  %v2754_v54 = vrot.slane %v4864_v33, %v4618_v52  ;;  %v4306_v52 = vld [vmem:[#allocation6 + $0x418] sm:$0xff]  }
 0xb1e   :  { %4024 = vmatprep.subr.bf16.mxu1 %v4284_v31 }
 0xb1f   :  { %4043 = vmatpush3.bf16.msra.mxu0 %v4291_v13 }
 0xb20   :  { %4044 = vmatprep.subr.bf16.mxu0 %v4292_v14 }
 0xb21   :  { %4025 = vmatpush3.bf16.msra.mxu1 %v4284_v31 }
 0xb22   :  { %4026 = vmatprep.subr.bf16.mxu1 %v4285_v0 }
 0xb23   :  { %4045 = vmatpush3.bf16.msra.mxu0 %v4292_v14 }
 0xb24   :  { %4046 = vmatprep.subr.bf16.mxu0 %v4293_v30 }
 0xb25   :  { %4027 = vmatpush3.bf16.msra.mxu1 %v4285_v0 }
 0xb26   :  { %4028 = vmatprep.subr.bf16.mxu1 %v4286_v58 }
 0xb27   :  { %4047 = vmatpush3.bf16.msra.mxu0 %v4293_v30 }
 0xb29   :  { %4029 = vmatpush3.bf16.msra.mxu1 %v4286_v58 }
 0xb2c   :  { %4031 = vmatmul.mubr.bf16.vlgmr.msra.gmra.mrb[36].mxu1 %v4737_v40  ;;  %v4294_v40 = vld [vmem:[#allocation6 + $0x3b8] sm:$0xff]  }
 0xb2d   :  { %4048 = vmatprep.subr.bf16.mxu0 %v4294_v40 }
 0xb2e   :  { %4049 = vmatpush3.bf16.msra.mxu0 %v4294_v40  ;;  %v4303_v40 = vld [vmem:[#allocation6 + $0x400] sm:$0xff]  }
 0xb2f   :  { %4054 = vmatprep.subr.bf16.mxu0 %v4295_v29 }
 0xbff   :  { %v4032_v55 = vpop.f32.mrb[36].mxu1 }
 0xc00   :  { %v2702_v63 = vadd.f32 %v4032_v55, %v2699_v36  ;;  %v2677_v2 = vpop.f32.mrb[37].mxu1  ;;  %v4307_v55 = vld [vmem:[#allocation6 + $0x420] sm:$0xff]  }
 0xc01   :  { %v2700_v61 = vadd.f32 %v2699_v36, %v2677_v2  ;;  %v4033_v3 = vpop.f32.mrb[38].mxu1  ;;  %v4309_v2 = vld [vmem:[#allocation6 + $0x430] sm:$0xff]  }
 0xc02   :  { %v3367_v4 = vmul.f32 -1.442695, %v2702_v63  ;;  %v2703_v5 = vadd.f32 %v4033_v3, %v2699_v36  ;;  %v2680_v16 = vpop.f32.mrb[39].mxu1  ;;  %v2874_v3 = vrot.slane %v4864_v33, %v4667_v17 }
 0xc03   :  { %v3365_v6 = vmul.f32 -1.442695, %v2700_v61  ;;  %v2701_v8 = vadd.f32 %v2699_v36, %v2680_v16  ;;  %v4305_v36 = vld [vmem:[#allocation6 + $0x410] sm:$0xff]  }
 0xc04   :  { %4355 = vpow2.f32 %v3367_v4  ;;  %v3368_v9 = vmul.f32 -1.442695, %v2703_v5 }
 0xc05   :  { %4357 = vpow2.f32 %v3365_v6  ;;  %v3366_v10 = vmul.f32 -1.442695, %v2701_v8 }
 0xc06   :  { %4359 = vpow2.f32 %v3368_v9 }
 0xc07   :  { %4361 = vpow2.f32 %v3366_v10 }
 0xc0e   :  { %v4356_v12 = vpop.eup %4355 }
 0xc0f   :  { %v4358_v15 = vpop.eup %4357  ;;  %v2718_v19 = vadd.f32 1.0, %v4356_v12 }
 0xc10   :  { %v4360_v28 = vpop.eup %4359  ;;  %v2716_v21 = vadd.f32 1.0, %v4358_v15 }
 0xc11   :  { %v4362_v23 = vpop.eup %4361  ;;  %4363 = vrcp.f32 %v2718_v19  ;;  %v2719_v25 = vadd.f32 1.0, %v4360_v28 }
 0xc12   :  { %4365 = vrcp.f32 %v2716_v21  ;;  %v2717_v32 = vadd.f32 1.0, %v4362_v23 }
 0xc13   :  { %4367 = vrcp.f32 %v2719_v25 }
 0xc14   :  { %4369 = vrcp.f32 %v2717_v32 }
 0xc1b   :  { %v4364_v34 = vpop.eup %4363 }
 0xc1c   :  { %v4366_v35 = vpop.eup %4365  ;;  %v2730_v39 = vmul.f32 %v4364_v34, %v2702_v63  ;;  %v4308_v63 = vld [vmem:[#allocation6 + $0x428] sm:$0xff]  }
 0xc1d   :  { %v4368_v37 = vpop.eup %4367  ;;  %v2728_v43 = vmul.f32 %v4366_v35, %v2700_v61  ;;  %v4310_v61 = vld [vmem:[#allocation6 + $0x438] sm:$0xff]  }
 0xc1e   :  { %v4370_v38 = vpop.eup %4369  ;;  %v2731_v41 = vmul.f32 %v4368_v37, %v2703_v5 }
 0xc1f   :  { %v2729_v45 = vmul.f32 %v4370_v38, %v2701_v8 }
 0xc20   :  { %v2750_v47 = vpack.c.bf16 %v2731_v41, %v2730_v39 }
 0xc21   :  { %v2749_v49 = vpack.c.bf16 %v2729_v45, %v2728_v43 }
 0xc23   :  { %4050 = vmatprep.mubr.bf16.mxu0 %v2749_v49 }
 0xc24   :  { %4051 = vmatmul.mubr.bf16.vlgmr.msra.gmra.mrb[40].mxu0 %v2750_v47 }
 0xc25   :  { %4055 = vmatpush3.bf16.msra.mxu0 %v4295_v29  ;;  %v4304_v29 = vld [vmem:[#allocation6 + $0x408] sm:$0xff]  }
 0xc26   :  { %4056 = vmatprep.subr.bf16.mxu0 %v4296_v42 }
 0xc29   :  { %4057 = vmatpush3.bf16.msra.mxu0 %v4296_v42 }
 0xc2a   :  { %4058 = vmatprep.subr.bf16.mxu0 %v4297_v44 }
 0xc2d   :  { %4059 = vmatpush3.bf16.msra.mxu0 %v4297_v44 }
 0xc2e   :  { %4060 = vmatprep.subr.bf16.mxu0 %v4298_v46 }
 0xc31   :  { %4061 = vmatpush3.bf16.msra.mxu0 %v4298_v46 }
 0xc32   :  { %4062 = vmatprep.subr.bf16.mxu0 %v4299_v48 }
 0xc35   :  { %4063 = vmatpush3.bf16.msra.mxu0 %v4299_v48 }
 0xc36   :  { %4064 = vmatprep.subr.bf16.mxu0 %v4300_v50 }
 0xc39   :  { %4065 = vmatpush3.bf16.msra.mxu0 %v4300_v50  ;;  %v3022_v50 = vrot.slane %v4864_v33, %v1556_v7 }
 0xc3a   :  { %4066 = vmatprep.subr.bf16.mxu0 %v4301_v51 }
 0xc3d   :  { %4067 = vmatpush3.bf16.msra.mxu0 %v4301_v51 }
 0xc3e   :  { %4068 = vmatprep.subr.bf16.mxu0 %v4302_v53 }
 0xc41   :  { %4069 = vmatpush3.bf16.msra.mxu0 %v4302_v53 }
 0xc42   :  { %4074 = vmatprep.subr.bf16.mxu0 %v4303_v40 }
 0xcf7   :  { %v4052_v31 = vpop.f32.mrb[40].mxu0 }
 0xcf8   :  { %v2837_v0 = vpop.f32.mrb[41].mxu0  ;;  %v2846_v24 = vadd.f32 %v4052_v31, %v2754_v54 }
 0xcf9   :  { %v4053_v58 = vpop.f32.mrb[42].mxu0  ;;  %v2838_v26 = vadd.f32 %v2837_v0, %v2754_v54 }
 0xcfa   :  { %v2849_v59 = vadd.f32 %v4053_v58, %v2754_v54  ;;  %v2840_v62 = vpop.f32.mrb[43].mxu0 }
 0xcfb   :  { %v2841_v13 = vadd.f32 %v2840_v62, %v2754_v54 }
 0xcfc   :  { %v2870_v14 = vpack.c.bf16 %v2849_v59, %v2846_v24 }
 0xcfd   :  { %v2869_v30 = vpack.c.bf16 %v2841_v13, %v2838_v26 }
 0xcff   :  { %4070 = vmatprep.mubr.bf16.mxu0 %v2869_v30 }
 0xd00   :  { %4071 = vmatmul.mubr.bf16.vlgmr.msra.gmra.mrb[44].mxu0 %v2870_v14 }
 0xd01   :  { %4075 = vmatpush3.bf16.msra.mxu0 %v4303_v40 }
 0xd02   :  { %4076 = vmatprep.subr.bf16.mxu0 %v4304_v29 }
 0xd05   :  { %4077 = vmatpush3.bf16.msra.mxu0 %v4304_v29 }
 0xd06   :  { %4078 = vmatprep.subr.bf16.mxu0 %v4305_v36 }
 0xd09   :  { %4079 = vmatpush3.bf16.msra.mxu0 %v4305_v36 }
 0xd0a   :  { %4080 = vmatprep.subr.bf16.mxu0 %v4306_v52 }
 0xd0d   :  { %4081 = vmatpush3.bf16.msra.mxu0 %v4306_v52 }
 0xd0e   :  { %4082 = vmatprep.subr.bf16.mxu0 %v4307_v55 }
 0xd11   :  { %4083 = vmatpush3.bf16.msra.mxu0 %v4307_v55 }
 0xd12   :  { %4084 = vmatprep.subr.bf16.mxu0 %v4308_v63 }
 0xd15   :  { %4085 = vmatpush3.bf16.msra.mxu0 %v4308_v63 }
 0xd16   :  { %4086 = vmatprep.subr.bf16.mxu0 %v4309_v2 }
 0xd19   :  { %4087 = vmatpush3.bf16.msra.mxu0 %v4309_v2 }
 0xd1a   :  { %4088 = vmatprep.subr.bf16.mxu0 %v4310_v61 }
 0xd1d   :  { %4089 = vmatpush3.bf16.msra.mxu0 %v4310_v61 }
 0xd1e   :  { %4094 = vmatprep.subr.bf16.mxu0 %v4455_v1 }
 0xdd3   :  { %v4072_v4 = vpop.f32.mrb[44].mxu0 }
 0xdd4   :  { %v2966_v5 = vadd.f32 %v4072_v4, %v2874_v3  ;;  %v2957_v16 = vpop.f32.mrb[45].mxu0 }
 0xdd5   :  { %v2958_v6 = vadd.f32 %v2957_v16, %v2874_v3  ;;  %v4073_v8 = vpop.f32.mrb[46].mxu0 }
 0xdd6   :  { %v3387_v9 = vmul.f32 -1.442695, %v2966_v5  ;;  %v2969_v10 = vadd.f32 %v4073_v8, %v2874_v3  ;;  %v2960_v12 = vpop.f32.mrb[47].mxu0 }
 0xdd7   :  { %v3385_v15 = vmul.f32 -1.442695, %v2958_v6  ;;  %v2961_v19 = vadd.f32 %v2960_v12, %v2874_v3 }
 0xdd8   :  { %4371 = vpow2.f32 %v3387_v9  ;;  %v3388_v28 = vmul.f32 -1.442695, %v2969_v10 }
 0xdd9   :  { %4373 = vpow2.f32 %v3385_v15  ;;  %v3386_v21 = vmul.f32 -1.442695, %v2961_v19 }
 0xdda   :  { %4375 = vpow2.f32 %v3388_v28 }
 0xddb   :  { %4377 = vpow2.f32 %v3386_v21 }
 0xde2   :  { %v4372_v23 = vpop.eup %4371 }
 0xde3   :  { %v4374_v25 = vpop.eup %4373  ;;  %v2986_v32 = vadd.f32 1.0, %v4372_v23 }
 0xde4   :  { %v4376_v17 = vpop.eup %4375  ;;  %v2984_v34 = vadd.f32 1.0, %v4374_v25 }
 0xde5   :  { %v4378_v35 = vpop.eup %4377  ;;  %4379 = vrcp.f32 %v2986_v32  ;;  %v2987_v37 = vadd.f32 1.0, %v4376_v17 }
 0xde6   :  { %4381 = vrcp.f32 %v2984_v34  ;;  %v2985_v38 = vadd.f32 1.0, %v4378_v35 }
 0xde7   :  { %4383 = vrcp.f32 %v2987_v37 }
 0xde8   :  { %4385 = vrcp.f32 %v2985_v38 }
 0xdef   :  { %v4380_v39 = vpop.eup %4379 }
 0xdf0   :  { %v4382_v41 = vpop.eup %4381  ;;  %v2998_v47 = vmul.f32 %v4380_v39, %v2966_v5 }
 0xdf1   :  { %v4384_v43 = vpop.eup %4383  ;;  %v2996_v42 = vmul.f32 %v4382_v41, %v2958_v6 }
 0xdf2   :  { %v4386_v45 = vpop.eup %4385  ;;  %v2999_v49 = vmul.f32 %v4384_v43, %v2969_v10 }
 0xdf3   :  { %v2997_v44 = vmul.f32 %v4386_v45, %v2961_v19 }
 0xdf4   :  { %v3018_v46 = vpack.c.bf16 %v2999_v49, %v2998_v47 }
 0xdf5   :  { %v3017_v48 = vpack.c.bf16 %v2997_v44, %v2996_v42 }
 0xdf7   :  { %4090 = vmatprep.mubr.bf16.mxu0 %v3017_v48 }
 0xdf8   :  { %4091 = vmatmul.mubr.bf16.vlgmr.msra.gmra.mrb[48].mxu0 %v3018_v46 }
 0xdf9   :  { %4098 = vmatprep.mubr.msk.bf16.mxu0 %vm4456_vm0, %v4455_v1 }
 0xecb   :  { %v4092_v51 = vpop.f32.mrb[48].mxu0 }
 0xecc   :  { %v3114_v53 = vadd.f32 %v4092_v51, %v3022_v50  ;;  %v3105_v54 = vpop.f32.mrb[49].mxu0 }
 0xecd   :  { %v3106_v31 = vadd.f32 %v3105_v54, %v3022_v50  ;;  %v4093_v0 = vpop.f32.mrb[50].mxu0 }
 0xece   :  { %v3122_v58 = vmul.f32 %v4843_v11, %v3114_v53  ;;  %v3117_v24 = vadd.f32 %v4093_v0, %v3022_v50  ;;  %v3108_v59 = vpop.f32.mrb[51].mxu0 }
 0xecf   :  { %v3120_v62 = vmul.f32 %v3106_v31, %v4847_v18  ;;  %v3109_v26 = vadd.f32 %v3108_v59, %v3022_v50 }
 0xed0   :  { %v3123_v13 = vmul.f32 %v4851_v20, %v3117_v24 }
 0xed1   :  { %v3121_v14 = vmul.f32 %v3109_v26, %v4855_v22 }
 0xed2   :  { %v3125_v30 = vpack.c.bf16 %v3123_v13, %v3122_v58 }
 0xed3   :  { %v3124_v27 = vpack.c.bf16 %v3121_v14, %v3120_v62 }
 0xed5   :  { %4095 = vmatpush3.bf16.msra.mxu0 %v3124_v27 }
 0xed6   :  { %4096 = vmatprep.subr.bf16.mxu0 %v4455_v1 }
 0xed9   :  { %4097 = vmatpush3.bf16.msra.mxu0 %v3125_v30 }
 0xedc   :  { %4099 = vmatmul.mubr.msk.bf16.vlgmr.msra.gmra.mrb[52].mxu0 %vm1666_vm2, %v4768_v60 }
 0xfaf   :  { %v3160_v7 = vpop.f32.mrb[52].mxu0 }
 0xfb0   :  { %v3167_v11 = vmul.f32 0.03125, %v3160_v7  ;;  %v4100_v33 = vpop.f32.mrb[53].mxu0 }
 0xfb1   :  { %v3163_v40 = vpop.f32.mrb[54].mxu0 }
 0xfb2   :  { %v3169_v18 = vadd.f32 %v3167_v11, %v4824_v56  ;;  %v3168_v29 = vmul.f32 0.03125, %v3163_v40  ;;  %v4101_v36 = vpop.f32.mrb[55].mxu0 }
 0xfb4   :  { %3171 = vst [vmem:[%s4906_s13] sm:$0xff] %v3169_v18  ;;  %v3170_v20 = vadd.f32 %v3168_v29, %v4827_v57 }
 0xfb6   :  { %3172 = vst [vmem:[%s4906_s13 + $0x8] sm:$0xff] %v3170_v20 }
 0xfb7   :  { %3181 = vsyncpa [#allocation3], 1 }
 0xfb8   :  { %3182 = vsyncpa [#allocation7], 1 }
 0xfb9   :  { %3183 = vsyncpa [#allocation4], 1 }

</bundles_post_ra>
